<compile_context>
chip_gen: v6e
topology: v6e:2x2x1
jax: 0.10.0
libtpu: 0.0.40
codegen_flags: <defaults>
</compile_context>

<pallas_src>
import functools

import jax
import jax.numpy as jnp
from jax import lax
from jax.experimental import pallas as pl
from jax.experimental.pallas import tpu as pltpu

LANE = 128  # per-modality padded feature width (lane-dense MXU tiles / stores)


def _bytes(*arrs):
    return int(sum(int(a.size) * a.dtype.itemsize for a in arrs))


# ------------------------------ single fused TMC kernel ------------------------------

def _tmc_kernel(patches_ref, convw_ref, convb_ref, pool_ref,
                projw_ref, projb_ref, w1_ref, b1_ref, w2_ref, b2_ref,
                depth_alpha_ref, rgb_alpha_ref, comb_ref,
                feat_ref, *, n_classes):
    L = depth_alpha_ref.shape[-1]  # 128: padded per-modality feature / class width

    # ---------------- encoder: one im2col conv matmul for BOTH modalities ----------------
    # patches: (BHW, 128) bf16, conv_w: (128, 256) bf16  ->  (BHW, 256) f32
    conv = jnp.dot(patches_ref[...], convw_ref[...],
                   preferred_element_type=jnp.float32)
    feat_ref[...] = jnp.maximum(conv + convb_ref[...], 0.0).astype(jnp.bfloat16)

    # global average pool over H*W: bf16 MXU matmul with a (B, BHW) averaging matrix
    pooled = jnp.dot(pool_ref[...], feat_ref[...],
                     preferred_element_type=jnp.float32)           # (B, 256) f32

    # projection Linear (block-diagonal over the two modalities)
    emb = jnp.dot(pooled.astype(jnp.bfloat16), projw_ref[...],
                  preferred_element_type=jnp.float32) + projb_ref[...]   # (B, 256)

    # ------------- classifier MLPs (both modalities in one matmul per layer) -------------
    h = jnp.maximum(
        jnp.dot(emb.astype(jnp.bfloat16), w1_ref[...],
                preferred_element_type=jnp.float32) + b1_ref[...], 0.0)   # (B, 256)
    logits = jnp.dot(h.astype(jnp.bfloat16), w2_ref[...],
                     preferred_element_type=jnp.float32) + b2_ref[...]    # (B, 256)

    logits_rgb = logits[:, :L]
    logits_depth = logits[:, L:]

    nc = jnp.float32(n_classes)
    cls_mask = lax.broadcasted_iota(jnp.int32, (1, L), 1) < n_classes

    def evidence(lg):
        # numerically stable softplus, zeroed on padded class lanes so padding never
        # leaks into the Dirichlet strengths / DS combination
        sp = jnp.maximum(lg, 0.0) + jnp.log1p(jnp.exp(-jnp.abs(lg)))
        return jnp.where(cls_mask, sp, 0.0)

    e_rgb = evidence(logits_rgb)      # alpha_rgb   = e_rgb + 1 on real classes
    e_depth = evidence(logits_depth)  # alpha_depth = e_depth + 1 on real classes

    def ds_combin_two(e1, e2):
        # S = sum(alpha) over real classes = sum(evidence) + n_classes (padding is 0)
        S1 = jnp.sum(e1, axis=1, keepdims=True) + nc
        S2 = jnp.sum(e2, axis=1, keepdims=True) + nc
        b1 = e1 / S1
        b2 = e2 / S2
        u1 = nc / S1
        u2 = nc / S2
        bb_sum = jnp.sum(b1, axis=1, keepdims=True) * jnp.sum(b2, axis=1, keepdims=True)
        bb_diag = jnp.sum(b1 * b2, axis=1, keepdims=True)
        denom = 1.0 - (bb_sum - bb_diag)   # same (un-guarded) form as the PyTorch reference
        b_a = (b1 * b2 + b1 * u2 + b2 * u1) / denom
        u_a = (u1 * u2) / denom
        S_a = nc / u_a
        return b_a * S_a + 1.0

    depth_alpha_ref[...] = (e_depth + 1.0).astype(depth_alpha_ref.dtype)
    rgb_alpha_ref[...] = (e_rgb + 1.0).astype(rgb_alpha_ref.dtype)
    comb_ref[...] = ds_combin_two(e_depth, e_rgb).astype(comb_ref.dtype)


def fused_tmc(patches, pool, p, *, n_classes):
    BHW, Kp = patches.shape
    L2 = p["conv_w"].shape[1]      # 2 * LANE
    L = L2 // 2
    B = pool.shape[0]

    vmem = pl.BlockSpec(memory_space=pltpu.MemorySpace.VMEM)
    out_sds = jax.ShapeDtypeStruct((B, L), jnp.float32)
    kernel = functools.partial(_tmc_kernel, n_classes=int(n_classes))
    flops = 2 * (BHW * Kp * L2 + B * BHW * L2 + 3 * B * L2 * L2)

    return pl.pallas_call(
        kernel,
        out_shape=(out_sds, out_sds, out_sds),   # depth_alpha, rgb_alpha, comb (padded)
        in_specs=[vmem] * 10,
        out_specs=(vmem, vmem, vmem),
        scratch_shapes=[pltpu.VMEM((BHW, L2), jnp.bfloat16)],
        compiler_params=pltpu.CompilerParams(vmem_limit_bytes=32 * 1024 * 1024),
        cost_estimate=pl.CostEstimate(
            flops=int(flops),
            transcendentals=int(4 * B * L),
            bytes_accessed=_bytes(patches, pool, *p.values()) + 3 * B * L * 4),
    )(patches, p["conv_w"], p["conv_b"], pool,
      p["proj_w"], p["proj_b"], p["w1"], p["b1"], p["w2"], p["b2"])


# ------------------------------------ forward (glue) ------------------------------------

def tmc_forward(rgb, depth, packed, n_classes):
    B, cin, H, W = rgb.shape
    k = 9 * cin

    def im2col(x):  # (B, cin, H, W) -> (B*H*W, 9*cin), tap-major / cin-minor
        x = jnp.transpose(x, (0, 2, 3, 1))                       # NHWC
        xp = jnp.pad(x, ((0, 0), (1, 1), (1, 1), (0, 0)))        # 3x3 "same"
        taps = [xp[:, dy:dy + H, dx:dx + W, :]
                for dy in range(3) for dx in range(3)]
        return jnp.concatenate(taps, axis=-1).reshape(B * H * W, k)

    # lane-dense bf16 patch slab: rgb patches in cols [0:k], depth in cols [k:2k]
    patches = jnp.zeros((B * H * W, LANE), jnp.float32)
    patches = patches.at[:, 0:k].set(im2col(rgb))
    patches = patches.at[:, k:2 * k].set(im2col(depth))
    patches = patches.astype(jnp.bfloat16)

    # averaging matrix for the global average pool (1/(H*W) per batch row block)
    pool = (jnp.repeat(jnp.eye(B, dtype=jnp.float32), H * W, axis=1)
            / float(H * W)).astype(jnp.bfloat16)                  # (B, B*H*W)

    depth_alpha, rgb_alpha, comb = fused_tmc(patches, pool, packed, n_classes=n_classes)
    return (depth_alpha[:, :n_classes],
            rgb_alpha[:, :n_classes],
            comb[:, :n_classes])


# ----------------------------- deterministic params + packing -----------------------------

def _linear_init(key, fan_in, fan_out):
    kw, kb = jax.random.split(key)
    bound = 1.0 / float(fan_in) ** 0.5
    w = jax.random.uniform(kw, (fan_in, fan_out), jnp.float32, -bound, bound)
    b = jax.random.uniform(kb, (fan_out,), jnp.float32, -bound, bound)
    return w, b


def init_params(key, cin, cenc, num_image_embeds, img_hidden_sz, hidden, n_classes):
    keys = jax.random.split(key, 8)

    def enc(k0, k1):
        conv_w, conv_b = _linear_init(k0, 9 * cin, cenc)
        proj_w, proj_b = _linear_init(k1, cenc, num_image_embeds * img_hidden_sz)
        return {"conv_w": conv_w, "conv_b": conv_b, "proj_w": proj_w, "proj_b": proj_b}

    def clf(k0, k1):
        d_in = num_image_embeds * img_hidden_sz
        w1, b1 = _linear_init(k0, d_in, hidden)
        w2, b2 = _linear_init(k1, hidden, n_classes)
        return (w1, b1, w2, b2)

    return {"rgbenc": enc(keys[0], keys[1]), "depthenc": enc(keys[2], keys[3]),
            "clf_rgb": clf(keys[4], keys[5]), "clf_depth": clf(keys[6], keys[7])}


def pack_params(raw, *, cin, cenc, num_image_embeds, img_hidden_sz, hidden, n_classes):
    """Pack both modalities into block-structured, 128-lane-padded bf16 MXU weights."""
    k = 9 * cin
    dout = num_image_embeds * img_hidden_sz
    assert 2 * k <= LANE and cenc <= LANE and dout <= LANE
    assert hidden <= LANE and n_classes <= LANE

    def pad_block(w):
        return jnp.zeros((LANE, LANE), jnp.float32).at[:w.shape[0], :w.shape[1]].set(w)

    def blk_diag(a, b):
        z = jnp.zeros((LANE, LANE), jnp.float32)
        return jnp.concatenate([jnp.concatenate([a, z], axis=1),
                                jnp.concatenate([z, b], axis=1)], axis=0)

    def pad_bias_pair(b_rgb, b_depth):
        out = jnp.zeros((1, 2 * LANE), jnp.float32)
        out = out.at[0, :b_rgb.shape[0]].set(b_rgb)
        out = out.at[0, LANE:LANE + b_depth.shape[0]].set(b_depth)
        return out

    # conv: patch cols [0:k] (rgb) -> output cols [0:LANE]; cols [k:2k] (depth) -> [LANE:2*LANE]
    conv_w = jnp.zeros((LANE, 2 * LANE), jnp.float32)
    conv_w = conv_w.at[0:k, 0:cenc].set(raw["rgbenc"]["conv_w"])
    conv_w = conv_w.at[k:2 * k, LANE:LANE + cenc].set(raw["depthenc"]["conv_w"])
    conv_b = pad_bias_pair(raw["rgbenc"]["conv_b"], raw["depthenc"]["conv_b"])

    proj_w = blk_diag(pad_block(raw["rgbenc"]["proj_w"]),
                      pad_block(raw["depthenc"]["proj_w"]))
    proj_b = pad_bias_pair(raw["rgbenc"]["proj_b"], raw["depthenc"]["proj_b"])

    w1_r, b1_r, w2_r, b2_r = raw["clf_rgb"]
    w1_d, b1_d, w2_d, b2_d = raw["clf_depth"]
    w1 = blk_diag(pad_block(w1_r), pad_block(w1_d))
    b1 = pad_bias_pair(b1_r, b1_d)
    w2 = blk_diag(pad_block(w2_r), pad_block(w2_d))
    b2 = pad_bias_pair(b2_r, b2_d)

    return {"conv_w": conv_w.astype(jnp.bfloat16), "conv_b": conv_b,
            "proj_w": proj_w.astype(jnp.bfloat16), "proj_b": proj_b,
            "w1": w1.astype(jnp.bfloat16), "b1": b1,
            "w2": w2.astype(jnp.bfloat16), "b2": b2}


# ---------------------------------------- main ----------------------------------------

if __name__ == "__main__":
    # args: img_hidden_sz=32, num_image_embeds=3, hidden=[64], n_classes=8, dropout inactive
    B, CIN, H, W = 2, 3, 16, 16
    CENC = 8
    NUM_IMAGE_EMBEDS = 3
    IMG_HIDDEN_SZ = 32
    HIDDEN = 64
    N_CLASSES = 8

    key = jax.random.PRNGKey(0)
    k_rgb, k_depth, k_params = jax.random.split(key, 3)
    rgb = jax.random.normal(k_rgb, (B, CIN, H, W), jnp.float32)
    depth = jax.random.normal(k_depth, (B, CIN, H, W), jnp.float32)

    raw = init_params(k_params, CIN, CENC, NUM_IMAGE_EMBEDS, IMG_HIDDEN_SZ, HIDDEN, N_CLASSES)
    params = pack_params(raw, cin=CIN, cenc=CENC, num_image_embeds=NUM_IMAGE_EMBEDS,
                         img_hidden_sz=IMG_HIDDEN_SZ, hidden=HIDDEN, n_classes=N_CLASSES)

    fwd = jax.jit(functools.partial(tmc_forward, n_classes=N_CLASSES))
    depth_alpha, rgb_alpha, depth_rgb_alpha = fwd(rgb, depth, params)
    jax.block_until_ready((depth_alpha, rgb_alpha, depth_rgb_alpha))

    assert depth_alpha.shape == (B, N_CLASSES)
    assert rgb_alpha.shape == (B, N_CLASSES)
    assert depth_rgb_alpha.shape == (B, N_CLASSES)
    assert bool(jnp.all(jnp.isfinite(depth_alpha)))
    assert bool(jnp.all(jnp.isfinite(rgb_alpha)))
    assert bool(jnp.all(jnp.isfinite(depth_rgb_alpha)))
    assert bool(jnp.all(depth_alpha >= 1.0)) and bool(jnp.all(rgb_alpha >= 1.0))
    print("KERNEL_OK")
</pallas_src>

<mosaic_0001>
module attributes {stable_mosaic.version = 11 : i64} {
  func.func @_tmc_kernel(%arg0: memref<512x128xbf16, #tpu.memory_space<vmem>>, %arg1: memref<128x256xbf16, #tpu.memory_space<vmem>>, %arg2: memref<1x256xf32, #tpu.memory_space<vmem>>, %arg3: memref<2x512xbf16, #tpu.memory_space<vmem>>, %arg4: memref<256x256xbf16, #tpu.memory_space<vmem>>, %arg5: memref<1x256xf32, #tpu.memory_space<vmem>>, %arg6: memref<256x256xbf16, #tpu.memory_space<vmem>>, %arg7: memref<1x256xf32, #tpu.memory_space<vmem>>, %arg8: memref<256x256xbf16, #tpu.memory_space<vmem>>, %arg9: memref<1x256xf32, #tpu.memory_space<vmem>>, %arg10: memref<2x128xf32, #tpu.memory_space<vmem>>, %arg11: memref<2x128xf32, #tpu.memory_space<vmem>>, %arg12: memref<2x128xf32, #tpu.memory_space<vmem>>, %arg13: memref<512x256xbf16, #tpu.memory_space<vmem>>) attributes {dimension_semantics = [], scalar_prefetch = 0 : i64, scratch_operands = 1 : i64, tpu.core_type = #tpu.core_type<tc>} {
    %c0 = arith.constant 0 : index
    %c0_0 = arith.constant 0 : index
    %0 = vector.load %arg0[%c0, %c0_0] : memref<512x128xbf16, #tpu.memory_space<vmem>>, vector<512x128xbf16>
    %c0_1 = arith.constant 0 : index
    %c0_2 = arith.constant 0 : index
    %1 = vector.load %arg1[%c0_1, %c0_2] : memref<128x256xbf16, #tpu.memory_space<vmem>>, vector<128x256xbf16>
    %cst = arith.constant dense<0.000000e+00> : vector<512x256xf32>
    %2 = tpu.matmul %0, %1, %cst {dimension_numbers = #tpu.dot_dimension_numbers<[1], [0], [0], [1], [0, 0, 1, 1], [], []>} : vector<512x128xbf16>, vector<128x256xbf16>, vector<512x256xf32> -> vector<512x256xf32>
    %c0_3 = arith.constant 0 : index
    %c0_4 = arith.constant 0 : index
    %3 = vector.load %arg2[%c0_3, %c0_4] : memref<1x256xf32, #tpu.memory_space<vmem>>, vector<1x256xf32>
    %4 = vector.broadcast %3 : vector<1x256xf32> to vector<512x256xf32>
    %5 = arith.addf %2, %4 : vector<512x256xf32>
    %cst_5 = arith.constant 0.000000e+00 : f32
    %6 = vector.broadcast %cst_5 : f32 to vector<512x256xf32>
    %7 = arith.maximumf %5, %6 : vector<512x256xf32>
    %8 = arith.truncf %7 : vector<512x256xf32> to vector<512x256xbf16>
    %c0_6 = arith.constant 0 : index
    %c0_7 = arith.constant 0 : index
    %9 = vector.load %arg13[%c0_6, %c0_7] : memref<512x256xbf16, #tpu.memory_space<vmem>>, vector<512x256xbf16>
    tpu.vector_store %arg13[%c0_6, %c0_7], %8 {strides = array<i32>} : memref<512x256xbf16, #tpu.memory_space<vmem>>, vector<512x256xbf16>,
    %c0_8 = arith.constant 0 : index
    %c0_9 = arith.constant 0 : index
    %10 = vector.load %arg3[%c0_8, %c0_9] : memref<2x512xbf16, #tpu.memory_space<vmem>>, vector<2x512xbf16>
    %c0_10 = arith.constant 0 : index
    %c0_11 = arith.constant 0 : index
    %11 = vector.load %arg13[%c0_10, %c0_11] : memref<512x256xbf16, #tpu.memory_space<vmem>>, vector<512x256xbf16>
    %cst_12 = arith.constant dense<0.000000e+00> : vector<2x256xf32>
    %12 = tpu.matmul %10, %11, %cst_12 {dimension_numbers = #tpu.dot_dimension_numbers<[1], [0], [0], [1], [0, 0, 1, 1], [], []>} : vector<2x512xbf16>, vector<512x256xbf16>, vector<2x256xf32> -> vector<2x256xf32>
    %13 = arith.truncf %12 : vector<2x256xf32> to vector<2x256xbf16>
    %c0_13 = arith.constant 0 : index
    %c0_14 = arith.constant 0 : index
    %14 = vector.load %arg4[%c0_13, %c0_14] : memref<256x256xbf16, #tpu.memory_space<vmem>>, vector<256x256xbf16>
    %cst_15 = arith.constant dense<0.000000e+00> : vector<2x256xf32>
    %15 = tpu.matmul %13, %14, %cst_15 {dimension_numbers = #tpu.dot_dimension_numbers<[1], [0], [0], [1], [0, 0, 1, 1], [], []>} : vector<2x256xbf16>, vector<256x256xbf16>, vector<2x256xf32> -> vector<2x256xf32>
    %c0_16 = arith.constant 0 : index
    %c0_17 = arith.constant 0 : index
    %16 = vector.load %arg5[%c0_16, %c0_17] : memref<1x256xf32, #tpu.memory_space<vmem>>, vector<1x256xf32>
    %17 = vector.broadcast %16 : vector<1x256xf32> to vector<2x256xf32>
    %18 = arith.addf %15, %17 : vector<2x256xf32>
    %19 = arith.truncf %18 : vector<2x256xf32> to vector<2x256xbf16>
    %c0_18 = arith.constant 0 : index
    %c0_19 = arith.constant 0 : index
    %20 = vector.load %arg6[%c0_18, %c0_19] : memref<256x256xbf16, #tpu.memory_space<vmem>>, vector<256x256xbf16>
    %cst_20 = arith.constant dense<0.000000e+00> : vector<2x256xf32>
    %21 = tpu.matmul %19, %20, %cst_20 {dimension_numbers = #tpu.dot_dimension_numbers<[1], [0], [0], [1], [0, 0, 1, 1], [], []>} : vector<2x256xbf16>, vector<256x256xbf16>, vector<2x256xf32> -> vector<2x256xf32>
    %c0_21 = arith.constant 0 : index
    %c0_22 = arith.constant 0 : index
    %22 = vector.load %arg7[%c0_21, %c0_22] : memref<1x256xf32, #tpu.memory_space<vmem>>, vector<1x256xf32>
    %23 = vector.broadcast %22 : vector<1x256xf32> to vector<2x256xf32>
    %24 = arith.addf %21, %23 : vector<2x256xf32>
    %cst_23 = arith.constant 0.000000e+00 : f32
    %25 = vector.broadcast %cst_23 : f32 to vector<2x256xf32>
    %26 = arith.maximumf %24, %25 : vector<2x256xf32>
    %27 = arith.truncf %26 : vector<2x256xf32> to vector<2x256xbf16>
    %c0_24 = arith.constant 0 : index
    %c0_25 = arith.constant 0 : index
    %28 = vector.load %arg8[%c0_24, %c0_25] : memref<256x256xbf16, #tpu.memory_space<vmem>>, vector<256x256xbf16>
    %cst_26 = arith.constant dense<0.000000e+00> : vector<2x256xf32>
    %29 = tpu.matmul %27, %28, %cst_26 {dimension_numbers = #tpu.dot_dimension_numbers<[1], [0], [0], [1], [0, 0, 1, 1], [], []>} : vector<2x256xbf16>, vector<256x256xbf16>, vector<2x256xf32> -> vector<2x256xf32>
    %c0_27 = arith.constant 0 : index
    %c0_28 = arith.constant 0 : index
    %30 = vector.load %arg9[%c0_27, %c0_28] : memref<1x256xf32, #tpu.memory_space<vmem>>, vector<1x256xf32>
    %31 = vector.broadcast %30 : vector<1x256xf32> to vector<2x256xf32>
    %32 = arith.addf %29, %31 : vector<2x256xf32>
    %33 = vector.extract_strided_slice %32 {offsets = [0, 0], sizes = [2, 128], strides = [1, 1]} : vector<2x256xf32> to vector<2x128xf32>
    %34 = vector.extract_strided_slice %32 {offsets = [0, 128], sizes = [2, 128], strides = [1, 1]} : vector<2x256xf32> to vector<2x128xf32>
    %35 = tpu.iota {dimensions = array<i32: 1>} : vector<1x128xi32>
    %c8_i32 = arith.constant 8 : i32
    %36 = vector.broadcast %c8_i32 : i32 to vector<1x128xi32>
    %37 = arith.cmpi slt, %35, %36 : vector<1x128xi32>
    %cst_29 = arith.constant 0.000000e+00 : f32
    %38 = vector.broadcast %cst_29 : f32 to vector<2x128xf32>
    %39 = arith.maximumf %33, %38 : vector<2x128xf32>
    %40 = math.absf %33 : vector<2x128xf32>
    %cst_30 = arith.constant 0.000000e+00 : f32
    %41 = vector.broadcast %cst_30 : f32 to vector<2x128xf32>
    %42 = arith.subf %41, %40 : vector<2x128xf32>
    %43 = math.exp %42 : vector<2x128xf32>
    %44 = math.log1p %43 : vector<2x128xf32>
    %45 = arith.addf %39, %44 : vector<2x128xf32>
    %cst_31 = arith.constant 0.000000e+00 : f32
    %46 = vector.shape_cast %37 : vector<1x128xi1> to vector<1x128xi1>
    %47 = vector.broadcast %46 : vector<1x128xi1> to vector<2x128xi1>
    %48 = vector.broadcast %cst_31 : f32 to vector<2x128xf32>
    %49 = arith.select %47, %45, %48 : vector<2x128xi1>, vector<2x128xf32>
    %cst_32 = arith.constant 0.000000e+00 : f32
    %50 = vector.broadcast %cst_32 : f32 to vector<2x128xf32>
    %51 = arith.maximumf %34, %50 : vector<2x128xf32>
    %52 = math.absf %34 : vector<2x128xf32>
    %cst_33 = arith.constant 0.000000e+00 : f32
    %53 = vector.broadcast %cst_33 : f32 to vector<2x128xf32>
    %54 = arith.subf %53, %52 : vector<2x128xf32>
    %55 = math.exp %54 : vector<2x128xf32>
    %56 = math.log1p %55 : vector<2x128xf32>
    %57 = arith.addf %51, %56 : vector<2x128xf32>
    %cst_34 = arith.constant 0.000000e+00 : f32
    %58 = vector.shape_cast %37 : vector<1x128xi1> to vector<1x128xi1>
    %59 = vector.broadcast %58 : vector<1x128xi1> to vector<2x128xi1>
    %60 = vector.broadcast %cst_34 : f32 to vector<2x128xf32>
    %61 = arith.select %59, %57, %60 : vector<2x128xi1>, vector<2x128xf32>
    %cst_35 = arith.constant 1.000000e+00 : f32
    %62 = vector.broadcast %cst_35 : f32 to vector<2x128xf32>
    %63 = arith.addf %61, %62 : vector<2x128xf32>
    %c0_36 = arith.constant 0 : index
    %c0_37 = arith.constant 0 : index
    %64 = vector.load %arg10[%c0_36, %c0_37] : memref<2x128xf32, #tpu.memory_space<vmem>>, vector<2x128xf32>
    tpu.vector_store %arg10[%c0_36, %c0_37], %63 {strides = array<i32>} : memref<2x128xf32, #tpu.memory_space<vmem>>, vector<2x128xf32>,
    %cst_38 = arith.constant 1.000000e+00 : f32
    %65 = vector.broadcast %cst_38 : f32 to vector<2x128xf32>
    %66 = arith.addf %49, %65 : vector<2x128xf32>
    %c0_39 = arith.constant 0 : index
    %c0_40 = arith.constant 0 : index
    %67 = vector.load %arg11[%c0_39, %c0_40] : memref<2x128xf32, #tpu.memory_space<vmem>>, vector<2x128xf32>
    tpu.vector_store %arg11[%c0_39, %c0_40], %66 {strides = array<i32>} : memref<2x128xf32, #tpu.memory_space<vmem>>, vector<2x128xf32>,
    %cst_41 = arith.constant dense<0.000000e+00> : vector<2xf32>
    %68 = vector.multi_reduction <add>, %61, %cst_41 [1] : vector<2x128xf32> to vector<2xf32>
    %69 = vector.shape_cast %68 : vector<2xf32> to vector<2x1xf32>
    %cst_42 = arith.constant 8.000000e+00 : f32
    %70 = vector.broadcast %cst_42 : f32 to vector<2x1xf32>
    %71 = arith.addf %69, %70 : vector<2x1xf32>
    %cst_43 = arith.constant dense<0.000000e+00> : vector<2xf32>
    %72 = vector.multi_reduction <add>, %49, %cst_43 [1] : vector<2x128xf32> to vector<2xf32>
    %73 = vector.shape_cast %72 : vector<2xf32> to vector<2x1xf32>
    %cst_44 = arith.constant 8.000000e+00 : f32
    %74 = vector.broadcast %cst_44 : f32 to vector<2x1xf32>
    %75 = arith.addf %73, %74 : vector<2x1xf32>
    %76 = vector.broadcast %71 : vector<2x1xf32> to vector<2x128xf32>
    %77 = arith.divf %61, %76 : vector<2x128xf32>
    %78 = vector.broadcast %75 : vector<2x1xf32> to vector<2x128xf32>
    %79 = arith.divf %49, %78 : vector<2x128xf32>
    %cst_45 = arith.constant 8.000000e+00 : f32
    %80 = vector.broadcast %cst_45 : f32 to vector<2x1xf32>
    %81 = arith.divf %80, %71 : vector<2x1xf32>
    %cst_46 = arith.constant 8.000000e+00 : f32
    %82 = vector.broadcast %cst_46 : f32 to vector<2x1xf32>
    %83 = arith.divf %82, %75 : vector<2x1xf32>
    %cst_47 = arith.constant dense<0.000000e+00> : vector<2xf32>
    %84 = vector.multi_reduction <add>, %77, %cst_47 [1] : vector<2x128xf32> to vector<2xf32>
    %85 = vector.shape_cast %84 : vector<2xf32> to vector<2x1xf32>
    %cst_48 = arith.constant dense<0.000000e+00> : vector<2xf32>
    %86 = vector.multi_reduction <add>, %79, %cst_48 [1] : vector<2x128xf32> to vector<2xf32>
    %87 = vector.shape_cast %86 : vector<2xf32> to vector<2x1xf32>
    %88 = arith.mulf %85, %87 : vector<2x1xf32>
    %89 = arith.mulf %77, %79 : vector<2x128xf32>
    %cst_49 = arith.constant dense<0.000000e+00> : vector<2xf32>
    %90 = vector.multi_reduction <add>, %89, %cst_49 [1] : vector<2x128xf32> to vector<2xf32>
    %91 = vector.shape_cast %90 : vector<2xf32> to vector<2x1xf32>
    %92 = arith.subf %88, %91 : vector<2x1xf32>
    %cst_50 = arith.constant 1.000000e+00 : f32
    %93 = vector.broadcast %cst_50 : f32 to vector<2x1xf32>
    %94 = arith.subf %93, %92 : vector<2x1xf32>
    %95 = arith.mulf %77, %79 : vector<2x128xf32>
    %96 = vector.broadcast %83 : vector<2x1xf32> to vector<2x128xf32>
    %97 = arith.mulf %77, %96 : vector<2x128xf32>
    %98 = arith.addf %95, %97 : vector<2x128xf32>
    %99 = vector.broadcast %81 : vector<2x1xf32> to vector<2x128xf32>
    %100 = arith.mulf %79, %99 : vector<2x128xf32>
    %101 = arith.addf %98, %100 : vector<2x128xf32>
    %102 = vector.broadcast %94 : vector<2x1xf32> to vector<2x128xf32>
    %103 = arith.divf %101, %102 : vector<2x128xf32>
    %104 = arith.mulf %81, %83 : vector<2x1xf32>
    %105 = arith.divf %104, %94 : vector<2x1xf32>
    %cst_51 = arith.constant 8.000000e+00 : f32
    %106 = vector.broadcast %cst_51 : f32 to vector<2x1xf32>
    %107 = arith.divf %106, %105 : vector<2x1xf32>
    %108 = vector.broadcast %107 : vector<2x1xf32> to vector<2x128xf32>
    %109 = arith.mulf %103, %108 : vector<2x128xf32>
    %cst_52 = arith.constant 1.000000e+00 : f32
    %110 = vector.broadcast %cst_52 : f32 to vector<2x128xf32>
    %111 = arith.addf %109, %110 : vector<2x128xf32>
    %c0_53 = arith.constant 0 : index
    %c0_54 = arith.constant 0 : index
    %112 = vector.load %arg12[%c0_53, %c0_54] : memref<2x128xf32, #tpu.memory_space<vmem>>, vector<2x128xf32>
    tpu.vector_store %arg12[%c0_53, %c0_54], %111 {strides = array<i32>} : memref<2x128xf32, #tpu.memory_space<vmem>>, vector<2x128xf32>,
    return
  }
}

</mosaic_0001>

<bundles_post_ra>
// kernel: tmc_forward.1
= control target key start
LH: loop header
LB: loop body
LE: loop exit
PB: predicated region body
PF: predicated region fallthrough
CT: control target
= control target key end

     0   :  { %18 = vsyncpa [#allocation4], 0  ;;  %v3382_v2 = vmov 0   ;;  %s4256_s0 = inlined_call_operand.vmem [shape: bf16[512,128], index: 0, kind: input, shape index: {}]   ;;  %s4257_s1 = inlined_call_operand.vmem [shape: bf16[128,256], index: 1, kind: input, shape index: {}]   ;;  %s4258_s2 = inlined_call_operand.vmem [shape: f32[1,256], index: 2, kind: input, shape index: {}]   ;;  %s4259_s3 = inlined_call_operand.vmem [shape: bf16[2,512], index: 3, kind: input, shape index: {}]   ;;  %s4260_s4 = inlined_call_operand.vmem [shape: bf16[256,256], index: 4, kind: input, shape index: {}]   ;;  %s4261_s5 = inlined_call_operand.vmem [shape: f32[1,256], index: 5, kind: input, shape index: {}]   ;;  %s4262_s6 = inlined_call_operand.vmem [shape: bf16[256,256], index: 6, kind: input, shape index: {}]   ;;  %s4263_s7 = inlined_call_operand.vmem [shape: f32[1,256], index: 7, kind: input, shape index: {}]   ;;  %s4264_s8 = inlined_call_operand.vmem [shape: bf16[256,256], index: 8, kind: input, shape index: {}]   ;;  %s4265_s9 = inlined_call_operand.vmem [shape: f32[1,256], index: 9, kind: input, shape index: {}]   ;;  %s4266_s10 = inlined_call_operand.hbm [shape: f32[2,128], index: 10, kind: output, shape index: {0}]   ;;  %s4267_s11 = inlined_call_operand.hbm [shape: f32[2,128], index: 11, kind: output, shape index: {1}]   ;;  %s4268_s12 = inlined_call_operand.hbm [shape: f32[2,128], index: 12, kind: output, shape index: {2}]  }
   0x1   :  { %v3102_v0 = vld [vmem:[%s4257_s1 + $0x74] ss:$8 sps:$4 sm:$0xff]   ;;  %v3104_v1 = vld [vmem:[%s4257_s1 + $0x70] ss:$8 sps:$4 sm:$0xff]   ;;  %437 = vmatprep.mubr.bf16.mxu0 %v3382_v2  ;;  %v3105_v3 = vld [vmem:[%s4257_s1 + $0x64] ss:$8 sps:$4 sm:$0xff]  }
   0x2   :  { %405 = vmatprep.subr.bf16.mxu0 %v3102_v0  ;;  %v3107_v4 = vld [vmem:[%s4257_s1 + $0x60] ss:$8 sps:$4 sm:$0xff]   ;;  %v3108_v5 = vld [vmem:[%s4257_s1 + $0x54] ss:$8 sps:$4 sm:$0xff]   ;;  %v3110_v6 = vld [vmem:[%s4257_s1 + $0x50] ss:$8 sps:$4 sm:$0xff]  }
   0x3   :  { %406 = vmatpush1.bf16.msra.mxu0 %v3104_v1  ;;  %v3111_v7 = vld [vmem:[%s4257_s1 + $0x44] ss:$8 sps:$4 sm:$0xff]   ;;  %v3113_v8 = vld [vmem:[%s4257_s1 + $0x40] ss:$8 sps:$4 sm:$0xff]   ;;  %v3114_v9 = vld [vmem:[%s4257_s1 + $0x34] ss:$8 sps:$4 sm:$0xff]  }
   0x4   :  { %407 = vmatprep.subr.bf16.mxu0 %v3105_v3  ;;  %v3116_v10 = vld [vmem:[%s4257_s1 + $0x30] ss:$8 sps:$4 sm:$0xff]   ;;  %v3117_v11 = vld [vmem:[%s4257_s1 + $0x24] ss:$8 sps:$4 sm:$0xff]   ;;  %v3119_v12 = vld [vmem:[%s4257_s1 + $0x20] ss:$8 sps:$4 sm:$0xff]  }
   0x5   :  { %v3120_v13 = vld [vmem:[%s4257_s1 + $0x14] ss:$8 sps:$4 sm:$0xff]   ;;  %v3122_v14 = vld [vmem:[%s4257_s1 + $0x10] ss:$8 sps:$4 sm:$0xff]   ;;  %v3123_v15 = vld [vmem:[%s4257_s1 + $0x4] ss:$8 sps:$4 sm:$0xff]  }
   0x6   :  { %v3125_v16 = vld [vmem:[%s4257_s1] ss:$8 sps:$4 sm:$0xff]   ;;  %v3128_v19 = vld [vmem:[%s4256_s0 + $0x10] sm:$0xff]   ;;  %v3129_v20 = vld [vmem:[%s4256_s0 + $0x18] sm:$0xff]  }
   0x7   :  { %408 = vmatpush1.bf16.msra.mxu0 %v3107_v4  ;;  %v3126_v17 = vld [vmem:[%s4256_s0] sm:$0xff]   ;;  %v3127_v18 = vld [vmem:[%s4256_s0 + $0x8] sm:$0xff]  }
   0x8   :  { %409 = vmatprep.subr.bf16.mxu0 %v3108_v5  ;;  %v3130_v21 = vld [vmem:[%s4256_s0 + $0x20] sm:$0xff]   ;;  %v3131_v22 = vld [vmem:[%s4256_s0 + $0x28] sm:$0xff]  }
   0xb   :  { %410 = vmatpush1.bf16.msra.mxu0 %v3110_v6 }
   0xc   :  { %411 = vmatprep.subr.bf16.mxu0 %v3111_v7 }
   0xf   :  { %412 = vmatpush1.bf16.msra.mxu0 %v3113_v8 }
  0x10   :  { %413 = vmatprep.subr.bf16.mxu0 %v3114_v9 }
  0x13   :  { %414 = vmatpush1.bf16.msra.mxu0 %v3116_v10 }
  0x14   :  { %415 = vmatprep.subr.bf16.mxu0 %v3117_v11 }
  0x17   :  { %416 = vmatpush1.bf16.msra.mxu0 %v3119_v12 }
  0x18   :  { %417 = vmatprep.subr.bf16.mxu0 %v3120_v13 }
  0x1b   :  { %418 = vmatpush1.bf16.msra.mxu0 %v3122_v14 }
  0x1c   :  { %419 = vmatprep.subr.bf16.mxu0 %v3123_v15 }
  0x1f   :  { %420 = vmatpush1.bf16.msra.mxu0 %v3125_v16 }
  0x22   :  { %438 = vmatmul.mubr.bf16.vlgmr.msra.gmra.mxu0 %v3126_v17 }
  0x23   :  { %447 = vmatprep.mubr.bf16.mxu0 %v3382_v2 }
  0x2a   :  { %448 = vmatmul.mubr.bf16.gmra.mxu0 %v3127_v18 }
  0x2b   :  { %457 = vmatprep.mubr.bf16.mxu0 %v3382_v2 }
  0x32   :  { %458 = vmatmul.mubr.bf16.gmra.mxu0 %v3128_v19 }
  0x33   :  { %467 = vmatprep.mubr.bf16.mxu0 %v3382_v2 }
  0x3a   :  { %468 = vmatmul.mubr.bf16.gmra.mxu0 %v3129_v20 }
  0x3b   :  { %477 = vmatprep.mubr.bf16.mxu0 %v3382_v2 }
  0x42   :  { %478 = vmatmul.mubr.bf16.gmra.mxu0 %v3130_v21 }
  0x43   :  { %487 = vmatprep.mubr.bf16.mxu0 %v3382_v2 }
  0x44   :  { %19 = vsyncpa [#allocation6], 0  ;;  %v3132_v23 = vld [vmem:[%s4256_s0 + $0x30] sm:$0xff]   ;;  %v3133_v24 = vld [vmem:[%s4256_s0 + $0x38] sm:$0xff]   ;;  %v123_v40 = vlaneseq  ;;  %vm2614_vm3 = vcmask 1041408   ;;  %s3385_s17 = smov [#allocation3]  }
  0x45   :  { %v3134_v25 = vld [vmem:[%s4256_s0 + $0x40] sm:$0xff]   ;;  %v3135_v26 = vld [vmem:[%s4256_s0 + $0x48] sm:$0xff]   ;;  %v3136_v27 = vld [vmem:[%s4256_s0 + $0x50] sm:$0xff]   ;;  %s2661_s18 = sshll.u32 %s3385_s17, 4  ;;  %s2662_s18 = int_to_ptr.vmem [resolvable:$true] %s2661_s18 }
  0x46   :  { %v3137_v28 = vld [vmem:[%s4256_s0 + $0x58] sm:$0xff]   ;;  %v3138_v29 = vld [vmem:[%s4256_s0 + $0x60] sm:$0xff]   ;;  %v3139_v30 = vld [vmem:[%s4256_s0 + $0x68] sm:$0xff]   ;;  %v3597_v42 = vshrl.u32 %v123_v40, 7 }
  0x47   :  { %v3140_v31 = vld [vmem:[%s4256_s0 + $0x70] sm:$0xff]   ;;  %v3141_v32 = vld [vmem:[%s4256_s0 + $0x78] sm:$0xff]   ;;  %v3142_v33 = vld [vmem:[%s4256_s0 + $0x80] sm:$0xff]  }
  0x48   :  { %v3143_v34 = vld [vmem:[%s4256_s0 + $0x88] sm:$0xff]   ;;  %v3144_v35 = vld [vmem:[%s4256_s0 + $0x90] sm:$0xff]   ;;  %v3145_v36 = vld [vmem:[%s4256_s0 + $0x98] sm:$0xff]   ;;  %v3601_v43 = vsub.s32 0, %v3597_v42  ;;  %v3610_v46 = vsub.s32 1, %v3597_v42 }
  0x49   :  { %v3146_v37 = vld [vmem:[%s4256_s0 + $0xa0] sm:$0xff]   ;;  %v3147_v38 = vld [vmem:[%s4256_s0 + $0xa8] sm:$0xff]   ;;  %v3148_v39 = vld [vmem:[%s4256_s0 + $0xb0] sm:$0xff]  }
  0x4a   :  { %488 = vmatmul.mubr.bf16.gmra.mxu0 %v3131_v22  ;;  %v3149_v41 = vld [vmem:[%s4256_s0 + $0xb8] sm:$0xff]   ;;  %v121_v44 = vld [vmem:[%s4258_s2] sm:$0x3]  ;;  %v3151_v53 = vld [vmem:[%s4256_s0 + $0xc8] sm:$0xff]  }
  0x4b   :  { %497 = vmatprep.mubr.bf16.mxu0 %v3382_v2  ;;  %v3150_v45 = vld [vmem:[%s4256_s0 + $0xc0] sm:$0xff]   ;;  %v3613_v47 = vrot.slane %v121_v44, %v3601_v43  ;;  %v3616_v49 = vrot.slane %v121_v44, %v3610_v46  ;;  %v3152_v5 = vld [vmem:[%s4256_s0 + $0xd0] sm:$0xff]   ;;  %v3153_v19 = vld [vmem:[%s4256_s0 + $0xd8] sm:$0xff]  }
  0x52   :  { %498 = vmatmul.mubr.bf16.gmra.mxu0 %v3132_v23 }
  0x53   :  { %507 = vmatprep.mubr.bf16.mxu0 %v3382_v2 }
  0x5a   :  { %508 = vmatmul.mubr.bf16.gmra.mxu0 %v3133_v24  ;;  %v3154_v24 = vld [vmem:[%s4256_s0 + $0xe0] sm:$0xff]  }
  0x5b   :  { %517 = vmatprep.mubr.bf16.mxu0 %v3382_v2 }
  0x62   :  { %518 = vmatmul.mubr.bf16.gmra.mxu0 %v3134_v25 }
  0x63   :  { %527 = vmatprep.mubr.bf16.mxu0 %v3382_v2 }
  0x6a   :  { %528 = vmatmul.mubr.bf16.gmra.mxu0 %v3135_v26 }
  0x6b   :  { %537 = vmatprep.mubr.bf16.mxu0 %v3382_v2 }
  0x72   :  { %538 = vmatmul.mubr.bf16.gmra.mxu0 %v3136_v27 }
  0x73   :  { %547 = vmatprep.mubr.bf16.mxu0 %v3382_v2 }
  0x7a   :  { %548 = vmatmul.mubr.bf16.gmra.mxu0 %v3137_v28 }
  0x7b   :  { %557 = vmatprep.mubr.bf16.mxu0 %v3382_v2 }
  0x82   :  { %558 = vmatmul.mubr.bf16.gmra.mxu0 %v3138_v29  ;;  %v3155_v29 = vld [vmem:[%s4256_s0 + $0xe8] sm:$0xff]  }
  0x83   :  { %567 = vmatprep.mubr.bf16.mxu0 %v3382_v2 }
  0x8a   :  { %568 = vmatmul.mubr.bf16.gmra.mxu0 %v3139_v30 }
  0x8b   :  { %577 = vmatprep.mubr.bf16.mxu0 %v3382_v2 }
  0x92   :  { %578 = vmatmul.mubr.bf16.gmra.mxu0 %v3140_v31 }
  0x93   :  { %587 = vmatprep.mubr.bf16.mxu0 %v3382_v2 }
  0x9a   :  { %588 = vmatmul.mubr.bf16.gmra.mxu0 %v3141_v32 }
  0x9b   :  { %597 = vmatprep.mubr.bf16.mxu0 %v3382_v2 }
  0xa2   :  { %598 = vmatmul.mubr.bf16.gmra.mxu0 %v3142_v33 }
  0xa3   :  { %607 = vmatprep.mubr.bf16.mxu0 %v3382_v2 }
  0xaa   :  { %608 = vmatmul.mubr.bf16.gmra.mxu0 %v3143_v34  ;;  %v3156_v34 = vld [vmem:[%s4256_s0 + $0xf0] sm:$0xff]  }
  0xab   :  { %617 = vmatprep.mubr.bf16.mxu0 %v3382_v2 }
  0xb2   :  { %618 = vmatmul.mubr.bf16.gmra.mxu0 %v3144_v35 }
  0xb3   :  { %627 = vmatprep.mubr.bf16.mxu0 %v3382_v2 }
  0xba   :  { %628 = vmatmul.mubr.bf16.gmra.mxu0 %v3145_v36 }
  0xbb   :  { %637 = vmatprep.mubr.bf16.mxu0 %v3382_v2 }
  0xc2   :  { %638 = vmatmul.mubr.bf16.gmra.mxu0 %v3146_v37 }
  0xc3   :  { %647 = vmatprep.mubr.bf16.mxu0 %v3382_v2 }
  0xca   :  { %648 = vmatmul.mubr.bf16.gmra.mxu0 %v3147_v38 }
  0xcb   :  { %657 = vmatprep.mubr.bf16.mxu0 %v3382_v2 }
  0xd2   :  { %658 = vmatmul.mubr.bf16.gmra.mxu0 %v3148_v39  ;;  %v3157_v39 = vld [vmem:[%s4256_s0 + $0xf8] sm:$0xff]  }
  0xd3   :  { %667 = vmatprep.mubr.bf16.mxu0 %v3382_v2 }
  0xda   :  { %668 = vmatmul.mubr.bf16.gmra.mxu0 %v3149_v41 }
  0xdb   :  { %677 = vmatprep.mubr.bf16.mxu0 %v3382_v2 }
  0xe2   :  { %v439_v48 = vpop.f32.mrf.mxu0  ;;  %678 = vmatmul.mubr.bf16.gmra.mxu0 %v3150_v45 }
  0xe3   :  { %687 = vmatprep.mubr.bf16.mxu0 %v3382_v2  ;;  %v440_v51 = vadd.f32 %v439_v48, %v3613_v47 }
  0xe4   :  { %v441_v50 = vpop.f32.mrf.mxu0 }
  0xe5   :  { %v442_v54 = vadd.f32 %v441_v50, %v3616_v49  ;;  %v758_v57 = vmax.f32 %v440_v51, 0.0 }
  0xe6   :  { %v443_v52 = vpop.f32.mrf.mxu0 }
  0xe7   :  { %v444_v55 = vadd.f32 %v443_v52, %v3613_v47  ;;  %v759_v61 = vmax.f32 %v442_v54, 0.0 }
  0xe8   :  { %v445_v56 = vpop.f32.mrf.mxu0 }
  0xe9   :  { %v760_v58 = vmax.f32 %v444_v55, 0.0  ;;  %v446_v59 = vadd.f32 %v445_v56, %v3616_v49 }
  0xea   :  { %v449_v60 = vpop.f32.mrf.mxu0  ;;  %688 = vmatmul.mubr.bf16.gmra.mxu0 %v3151_v53  ;;  %v3383_v53 = vmov 1966171168  }
  0xeb   :  { %v3626_v62 = vpack.c.bf16 %v760_v58, %v758_v57  ;;  %v761_v63 = vmax.f32 %v446_v59, 0.0  ;;  %697 = vmatprep.mubr.bf16.mxu0 %v3382_v2  ;;  %v450_v1 = vadd.f32 %v449_v60, %v3613_v47  ;;  %v1409_v54 = vunpack.c.l.s4 %v3383_v53 }
  0xec   :  { %v451_v0 = vpop.f32.mrf.mxu0 }
  0xed   :  { %v3630_v3 = vpack.c.bf16 %v761_v63, %v759_v61  ;;  %v452_v6 = vadd.f32 %v451_v0, %v3616_v49  ;;  %v762_v9 = vmax.f32 %v450_v1, 0.0  ;;  %v1410_v58 = vunpack.c.0.s8 %v1409_v54  ;;  %v2808_v1 = vld.sshfl [vmem:[%s4259_s3] sm:$0x33 pattern:$0x75316420] }
  0xee   :  { %v453_v4 = vpop.f32.mrf.mxu0 }
  0xef   :  { %v454_v7 = vadd.f32 %v453_v4, %v3613_v47  ;;  %v763_v13 = vmax.f32 %v452_v6, 0.0 }
  0xf0   :  { %v455_v8 = vpop.f32.mrf.mxu0 }
  0xf1   :  { %v764_v10 = vmax.f32 %v454_v7, 0.0  ;;  %v456_v11 = vadd.f32 %v455_v8, %v3616_v49  ;;  %v1407_v7 = vcombine.high %v2808_v1, %v2808_v1 }
  0xf2   :  { %v3638_v12 = vpop.f32.mrf.mxu0  ;;  %698 = vmatmul.mubr.bf16.gmra.mxu0 %v3152_v5 }
  0xf3   :  { %v3640_v14 = vpack.c.bf16 %v764_v10, %v762_v9  ;;  %v765_v15 = vmax.f32 %v456_v11, 0.0  ;;  %707 = vmatprep.mubr.bf16.mxu0 %v3382_v2 }
  0xf4   :  { %v3643_v16 = vpop.f32.mrf.mxu0 }
  0xf5   :  { %v3645_v17 = vpack.c.bf16 %v765_v15, %v763_v13  ;;  %v1413_v13 = vsub.s32 %v1410_v58, %v3597_v42 }
  0xf6   :  { %v3647_v18 = vpop.f32.mrf.mxu0 }
  0xf8   :  { %v3652_v20 = vpop.f32.mrf.mxu0 }
  0xfa   :  { %v3654_v21 = vpop.f32.mrf.mxu0  ;;  %708 = vmatmul.mubr.bf16.gmra.mxu0 %v3153_v19 }
  0xfb   :  { %717 = vmatprep.mubr.bf16.mxu0 %v3382_v2 }
  0xfc   :  { %v3657_v22 = vpop.f32.mrf.mxu0 }
  0xfe   :  { %v3659_v23 = vpop.f32.mrf.mxu0 }
 0x100   :  { %v3664_v25 = vpop.f32.mrf.mxu0 }
 0x101   :  { %v476_v42 = vadd.f32 %v3664_v25, %v3616_v49 }
 0x102   :  { %v3666_v26 = vpop.f32.mrf.mxu0  ;;  %718 = vmatmul.mubr.bf16.gmra.mxu0 %v3154_v24 }
 0x103   :  { %727 = vmatprep.mubr.bf16.mxu0 %v3382_v2 }
 0x104   :  { %v481_v27 = vpop.f32.mrf.mxu0 }
 0x106   :  { %v3669_v28 = vpop.f32.mrf.mxu0 }
 0x107   :  { %v484_v54 = vadd.f32 %v3669_v28, %v3613_v47 }
 0x108   :  { %v485_v30 = vpop.f32.mrf.mxu0 }
 0x109   :  { %v3689_v59 = vadd.f32 %v485_v30, %v3616_v49 }
 0x10a   :  { %v489_v31 = vpop.f32.mrf.mxu0  ;;  %728 = vmatmul.mubr.bf16.gmra.mxu0 %v3155_v29 }
 0x10b   :  { %737 = vmatprep.mubr.bf16.mxu0 %v3382_v2  ;;  %v777_v25 = vmax.f32 %v3689_v59, 0.0 }
 0x10c   :  { %v491_v32 = vpop.f32.mrf.mxu0 }
 0x10d   :  { %v492_v8 = vadd.f32 %v491_v32, %v3616_v49 }
 0x10e   :  { %v493_v33 = vpop.f32.mrf.mxu0 }
 0x10f   :  { %v494_v15 = vadd.f32 %v493_v33, %v3613_v47  ;;  %v482_v33 = vadd.f32 %v481_v27, %v3616_v49 }
 0x110   :  { %v495_v35 = vpop.f32.mrf.mxu0 }
 0x111   :  { %v496_v60 = vadd.f32 %v495_v35, %v3616_v49  ;;  %v775_v28 = vmax.f32 %v482_v33, 0.0 }
 0x112   :  { %v499_v36 = vpop.f32.mrf.mxu0  ;;  %738 = vmatmul.mubr.bf16.gmra.mxu0 %v3156_v34 }
 0x113   :  { %747 = vmatprep.mubr.bf16.mxu0 %v3382_v2  ;;  %v500_v9 = vadd.f32 %v499_v36, %v3613_v47  ;;  %v781_v32 = vmax.f32 %v496_v60, 0.0  ;;  %v480_v60 = vadd.f32 %v3666_v26, %v3613_v47 }
 0x114   :  { %v501_v37 = vpop.f32.mrf.mxu0 }
 0x115   :  { %v502_v56 = vadd.f32 %v501_v37, %v3616_v49  ;;  %v3701_v37 = vrot.slane %v1407_v7, %v1413_v13 }
 0x116   :  { %v503_v38 = vpop.f32.mrf.mxu0 }
 0x117   :  { %v504_v61 = vadd.f32 %v503_v38, %v3613_v47  ;;  %v783_v19 = vmax.f32 %v502_v56, 0.0  ;;  %v3703_v38 = vrot.slane %v2808_v1, %v1413_v13  ;;  %1780 = vmatprep.mubr.bf16.mxu1 %v3701_v37  ;;  %v470_v13 = vadd.f32 %v3654_v21, %v3613_v47 }
 0x118   :  { %v505_v41 = vpop.f32.mrf.mxu0 }
 0x119   :  { %v506_v50 = vadd.f32 %v505_v41, %v3616_v49  ;;  %v784_v30 = vmax.f32 %v504_v61, 0.0  ;;  %v770_v33 = vmax.f32 %v470_v13, 0.0 }
 0x11a   :  { %v509_v44 = vpop.f32.mrf.mxu0  ;;  %748 = vmatmul.mubr.bf16.gmra.mxu0 %v3157_v39 }
 0x11b   :  { %v510_v2 = vadd.f32 %v509_v44, %v3613_v47  ;;  %v785_v4 = vmax.f32 %v506_v50, 0.0  ;;  %v490_v44 = vadd.f32 %v489_v31, %v3613_v47  ;;  %v779_v50 = vmax.f32 %v492_v8, 0.0 }
 0x11c   :  { %v511_v45 = vpop.f32.mrf.mxu0  ;;  %v773_v8 = vmax.f32 %v476_v42, 0.0  ;;  %v460_v42 = vadd.f32 %v3638_v12, %v3613_v47 }
 0x11d   :  { %v512_v51 = vadd.f32 %v511_v45, %v3616_v49  ;;  %v786_v10 = vmax.f32 %v510_v2, 0.0  ;;  %v3046_v39 = vpack.c.bf16 %v785_v4, %v783_v19  ;;  %v782_v45 = vmax.f32 %v500_v9, 0.0 }
 0x11e   :  { %v513_v48 = vpop.f32.mrf.mxu0  ;;  %v780_v2 = vmax.f32 %v494_v15, 0.0  ;;  %v3044_v31 = vpack.c.bf16 %v781_v32, %v779_v50  ;;  %v778_v61 = vmax.f32 %v490_v44, 0.0  ;;  %v466_v4 = vadd.f32 %v3652_v20, %v3616_v49 }
 0x11f   :  { %v514_v52 = vadd.f32 %v513_v48, %v3613_v47  ;;  %v787_v5 = vmax.f32 %v512_v51, 0.0  ;;  %v3045_v27 = vpack.c.bf16 %v784_v30, %v782_v45  ;;  %v774_v15 = vmax.f32 %v480_v60, 0.0 }
 0x120   :  { %v515_v55 = vpop.f32.mrf.mxu0  ;;  %v3043_v26 = vpack.c.bf16 %v780_v2, %v778_v61  ;;  %v464_v30 = vadd.f32 %v3647_v18, %v3613_v47 }
 0x121   :  { %v516_v57 = vadd.f32 %v515_v55, %v3616_v49  ;;  %v788_v63 = vmax.f32 %v514_v52, 0.0 }
 0x122   :  { %v519_v0 = vpop.f32.mrf.mxu0  ;;  %v768_v18 = vmax.f32 %v464_v30, 0.0 }
 0x123   :  { %v789_v6 = vmax.f32 %v516_v57, 0.0  ;;  %v520_v24 = vadd.f32 %v519_v0, %v3613_v47  ;;  %v3047_v35 = vpack.c.bf16 %v788_v63, %v786_v10  ;;  %v472_v0 = vadd.f32 %v3657_v22, %v3616_v49 }
 0x124   :  { %v521_v11 = vpop.f32.mrf.mxu0  ;;  %v3042_v10 = vpack.c.bf16 %v777_v25, %v775_v28 }
 0x125   :  { %v3048_v29 = vpack.c.bf16 %v789_v6, %v787_v5  ;;  %v522_v36 = vadd.f32 %v521_v11, %v3616_v49  ;;  %v790_v51 = vmax.f32 %v520_v24, 0.0  ;;  %v474_v5 = vadd.f32 %v3659_v23, %v3613_v47 }
 0x126   :  { %v523_v34 = vpop.f32.mrf.mxu0  ;;  %v776_v6 = vmax.f32 %v484_v54, 0.0  ;;  %v462_v11 = vadd.f32 %v3643_v16, %v3616_v49  ;;  %v771_v19 = vmax.f32 %v472_v0, 0.0 }
 0x127   :  { %v524_v41 = vadd.f32 %v523_v34, %v3613_v47  ;;  %1748 = vmatprep.subr.bf16.mxu1 %v3048_v29  ;;  %v791_v56 = vmax.f32 %v522_v36, 0.0  ;;  %v769_v34 = vmax.f32 %v466_v4, 0.0 }
 0x128   :  { %v525_v48 = vpop.f32.mrf.mxu0  ;;  %1749 = vmatpush1.bf16.msra.mxu1 %v3047_v35  ;;  %v772_v35 = vmax.f32 %v474_v5, 0.0  ;;  %v3041_v32 = vpack.c.bf16 %v776_v6, %v774_v15  ;;  %v767_v45 = vmax.f32 %v462_v11, 0.0 }
 0x129   :  { %v792_v52 = vmax.f32 %v524_v41, 0.0  ;;  %v526_v53 = vadd.f32 %v525_v48, %v3616_v49  ;;  %1750 = vmatprep.subr.bf16.mxu1 %v3046_v39  ;;  %v3040_v41 = vpack.c.bf16 %v773_v8, %v771_v19 }
 0x12a   :  { %v529_v55 = vpop.f32.mrf.mxu0  ;;  %v3039_v50 = vpack.c.bf16 %v772_v35, %v770_v33 }
 0x12b   :  { %v3716_v57 = vpack.c.bf16 %v792_v52, %v790_v51  ;;  %v793_v58 = vmax.f32 %v526_v53, 0.0  ;;  %v530_v59 = vadd.f32 %v529_v55, %v3613_v47  ;;  %v3038_v52 = vpack.c.bf16 %v769_v34, %v767_v45 }
 0x12c   :  { %v531_v63 = vpop.f32.mrf.mxu0  ;;  %1751 = vmatpush1.bf16.msra.mxu1 %v3045_v27  ;;  %v766_v53 = vmax.f32 %v460_v42, 0.0 }
 0x12d   :  { %v3722_v1 = vpack.c.bf16 %v793_v58, %v791_v56  ;;  %1752 = vmatprep.subr.bf16.mxu1 %v3044_v31  ;;  %v532_v9 = vadd.f32 %v531_v63, %v3616_v49  ;;  %v794_v23 = vmax.f32 %v530_v59, 0.0 }
 0x12e   :  { %v533_v7 = vpop.f32.mrf.mxu0  ;;  %v3037_v25 = vpack.c.bf16 %v768_v18, %v766_v53 }
 0x12f   :  { %v534_v22 = vadd.f32 %v533_v7, %v3613_v47  ;;  %v795_v16 = vmax.f32 %v532_v9, 0.0 }
 0x130   :  { %v535_v20 = vpop.f32.mrf.mxu0  ;;  %1753 = vmatpush1.bf16.msra.mxu1 %v3043_v26 }
 0x131   :  { %v796_v24 = vmax.f32 %v534_v22, 0.0  ;;  %v536_v29 = vadd.f32 %v535_v20, %v3616_v49  ;;  %1754 = vmatprep.subr.bf16.mxu1 %v3042_v10 }
 0x132   :  { %v3738_v39 = vpop.f32.mrf.mxu0 }
 0x133   :  { %v3740_v36 = vpack.c.bf16 %v796_v24, %v794_v23  ;;  %v797_v21 = vmax.f32 %v536_v29, 0.0 }
 0x134   :  { %v3744_v44 = vpop.f32.mrf.mxu0  ;;  %1755 = vmatpush1.bf16.msra.mxu1 %v3041_v32 }
 0x135   :  { %v3746_v48 = vpack.c.bf16 %v797_v21, %v795_v16  ;;  %1756 = vmatprep.subr.bf16.mxu1 %v3040_v41 }
 0x136   :  { %v3748_v51 = vpop.f32.mrf.mxu0 }
 0x138   :  { %v3750_v54 = vpop.f32.mrf.mxu0  ;;  %1757 = vmatpush1.bf16.msra.mxu1 %v3039_v50 }
 0x139   :  { %1758 = vmatprep.subr.bf16.mxu1 %v3038_v52 }
 0x13a   :  { %v3752_v12 = vpop.f32.mrf.mxu0 }
 0x13c   :  { %v3754_v2 = vpop.f32.mrf.mxu0  ;;  %1759 = vmatpush1.bf16.msra.mxu1 %v3037_v25 }
 0x13d   :  { %1760 = vmatprep.subr.bf16.mxu1 %v3645_v17 }
 0x13e   :  { %v3757_v27 = vpop.f32.mrf.mxu0 }
 0x140   :  { %v555_v55 = vpop.f32.mrf.mxu0  ;;  %1761 = vmatpush1.bf16.msra.mxu1 %v3640_v14 }
 0x141   :  { %1762 = vmatprep.subr.bf16.mxu1 %v3630_v3 }
 0x142   :  { %v3761_v31 = vpop.f32.mrf.mxu0 }
 0x144   :  { %v561_v56 = vpop.f32.mrf.mxu0  ;;  %1763 = vmatpush1.bf16.msra.mxu1 %v3626_v62 }
 0x146   :  { %v563_v58 = vpop.f32.mrf.mxu0 }
 0x148   :  { %v565_v60 = vpop.f32.mrf.mxu0 }
 0x149   :  { %v566_v41 = vadd.f32 %v565_v60, %v3616_v49 }
 0x14a   :  { %v569_v61 = vpop.f32.mrf.mxu0 }
 0x14c   :  { %v571_v63 = vpop.f32.mrf.mxu0 }
 0x14d   :  { %v572_v35 = vadd.f32 %v571_v63, %v3616_v49  ;;  %v556_v63 = vadd.f32 %v555_v55, %v3616_v49 }
 0x14e   :  { %v573_v0 = vpop.f32.mrf.mxu0 }
 0x14f   :  { %v574_v42 = vadd.f32 %v573_v0, %v3613_v47  ;;  %v811_v0 = vmax.f32 %v572_v35, 0.0  ;;  %v542_v35 = vadd.f32 %v3744_v44, %v3616_v49 }
 0x150   :  { %v575_v28 = vpop.f32.mrf.mxu0 }
 0x151   :  { %v576_v20 = vadd.f32 %v575_v28, %v3616_v49  ;;  %v562_v28 = vadd.f32 %v561_v56, %v3616_v49 }
 0x152   :  { %v579_v59 = vpop.f32.mrf.mxu0 }
 0x153   :  { %v580_v29 = vadd.f32 %v579_v59, %v3613_v47  ;;  %v813_v50 = vmax.f32 %v576_v20, 0.0  ;;  %v570_v59 = vadd.f32 %v569_v61, %v3613_v47  ;;  %v546_v20 = vadd.f32 %v3750_v54, %v3616_v49 }
 0x154   :  { %v581_v17 = vpop.f32.mrf.mxu0 }
 0x155   :  { %v582_v22 = vadd.f32 %v581_v17, %v3616_v49  ;;  %v814_v17 = vmax.f32 %v580_v29, 0.0  ;;  %v3060_v55 = vpack.c.bf16 %v813_v50, %v811_v0  ;;  %v805_v29 = vmax.f32 %v556_v63, 0.0 }
 0x156   :  { %v583_v4 = vpop.f32.mrf.mxu0  ;;  %v540_v63 = vadd.f32 %v3738_v39, %v3613_v47 }
 0x157   :  { %v584_v11 = vadd.f32 %v583_v4, %v3613_v47  ;;  %v815_v32 = vmax.f32 %v582_v22, 0.0  ;;  %v810_v22 = vmax.f32 %v570_v59, 0.0 }
 0x158   :  { %v585_v5 = vpop.f32.mrf.mxu0 }
 0x159   :  { %v586_v3 = vadd.f32 %v585_v5, %v3616_v49  ;;  %v816_v33 = vmax.f32 %v584_v11, 0.0  ;;  %v552_v11 = vadd.f32 %v3754_v2, %v3616_v49 }
 0x15a   :  { %v589_v6 = vpop.f32.mrf.mxu0 }
 0x15b   :  { %v590_v62 = vadd.f32 %v589_v6, %v3613_v47  ;;  %v817_v19 = vmax.f32 %v586_v3, 0.0  ;;  %v812_v3 = vmax.f32 %v574_v42, 0.0 }
 0x15c   :  { %v591_v26 = vpop.f32.mrf.mxu0 }
 0x15d   :  { %v592_v7 = vadd.f32 %v591_v26, %v3616_v49  ;;  %v818_v30 = vmax.f32 %v590_v62, 0.0  ;;  %v3062_v52 = vpack.c.bf16 %v817_v19, %v815_v32  ;;  %v564_v26 = vadd.f32 %v563_v58, %v3613_v47 }
 0x15e   :  { %v593_v14 = vpop.f32.mrf.mxu0  ;;  %v554_v19 = vadd.f32 %v3757_v27, %v3613_v47  ;;  %v550_v32 = vadd.f32 %v3752_v12, %v3613_v47 }
 0x15f   :  { %v594_v8 = vadd.f32 %v593_v14, %v3613_v47  ;;  %v819_v23 = vmax.f32 %v592_v7, 0.0  ;;  %v809_v14 = vmax.f32 %v566_v41, 0.0  ;;  %v3061_v7 = vpack.c.bf16 %v816_v33, %v814_v17 }
 0x160   :  { %v595_v9 = vpop.f32.mrf.mxu0  ;;  %v544_v33 = vadd.f32 %v3748_v51, %v3613_v47  ;;  %v799_v17 = vmax.f32 %v542_v35, 0.0 }
 0x161   :  { %v596_v10 = vadd.f32 %v595_v9, %v3616_v49  ;;  %v820_v13 = vmax.f32 %v594_v8, 0.0  ;;  %v560_v9 = vadd.f32 %v3761_v31, %v3613_v47  ;;  %v3059_v31 = vpack.c.bf16 %v812_v3, %v810_v22 }
 0x162   :  { %v599_v15 = vpop.f32.mrf.mxu0  ;;  %v800_v51 = vmax.f32 %v544_v33, 0.0 }
 0x163   :  { %v821_v24 = vmax.f32 %v596_v10, 0.0  ;;  %v600_v21 = vadd.f32 %v599_v15, %v3613_v47  ;;  %v3063_v45 = vpack.c.bf16 %v820_v13, %v818_v30  ;;  %v807_v13 = vmax.f32 %v562_v28, 0.0 }
 0x164   :  { %v601_v34 = vpop.f32.mrf.mxu0  ;;  %v802_v28 = vmax.f32 %v550_v32, 0.0 }
 0x165   :  { %v3064_v16 = vpack.c.bf16 %v821_v24, %v819_v23  ;;  %v602_v53 = vadd.f32 %v601_v34, %v3616_v49  ;;  %v822_v4 = vmax.f32 %v600_v21, 0.0  ;;  %v808_v23 = vmax.f32 %v564_v26, 0.0 }
 0x166   :  { %v603_v18 = vpop.f32.mrf.mxu0  ;;  %v3058_v30 = vpack.c.bf16 %v809_v14, %v807_v13  ;;  %v803_v21 = vmax.f32 %v552_v11, 0.0 }
 0x167   :  { %v604_v25 = vadd.f32 %v603_v18, %v3613_v47  ;;  %1764 = vmatprep.subr.bf16.mxu1 %v3064_v16  ;;  %v823_v62 = vmax.f32 %v602_v53, 0.0  ;;  %v806_v16 = vmax.f32 %v560_v9, 0.0  ;;  %v804_v18 = vmax.f32 %v554_v19, 0.0 }
 0x168   :  { %v605_v60 = vpop.f32.mrf.mxu0  ;;  %1765 = vmatpush2.bf16.msra.mxu1 %v3063_v45  ;;  %v801_v45 = vmax.f32 %v546_v20, 0.0  ;;  %v3056_v44 = vpack.c.bf16 %v805_v29, %v803_v21 }
 0x169   :  { %v824_v5 = vmax.f32 %v604_v25, 0.0  ;;  %v606_v6 = vadd.f32 %v605_v60, %v3616_v49  ;;  %1766 = vmatprep.subr.bf16.mxu1 %v3062_v52  ;;  %v3057_v50 = vpack.c.bf16 %v808_v23, %v806_v16  ;;  %v3055_v0 = vpack.c.bf16 %v804_v18, %v802_v28 }
 0x16a   :  { %v609_v8 = vpop.f32.mrf.mxu0 }
 0x16b   :  { %v3784_v56 = vpack.c.bf16 %v824_v5, %v822_v4  ;;  %v825_v61 = vmax.f32 %v606_v6, 0.0  ;;  %v610_v15 = vadd.f32 %v609_v8, %v3613_v47  ;;  %v3054_v5 = vpack.c.bf16 %v801_v45, %v799_v17 }
 0x16c   :  { %v611_v10 = vpop.f32.mrf.mxu0  ;;  %1767 = vmatpush2.bf16.msra.mxu1 %v3061_v7  ;;  %v798_v6 = vmax.f32 %v540_v63, 0.0 }
 0x16d   :  { %v3790_v58 = vpack.c.bf16 %v825_v61, %v823_v62  ;;  %1768 = vmatprep.subr.bf16.mxu1 %v3060_v55  ;;  %v612_v34 = vadd.f32 %v611_v10, %v3616_v49  ;;  %v826_v27 = vmax.f32 %v610_v15, 0.0  ;;  %v1423_v61 = vcombine.high %v3701_v37, %v3701_v37 }
 0x16e   :  { %v613_v24 = vpop.f32.mrf.mxu0  ;;  %v3053_v14 = vpack.c.bf16 %v800_v51, %v798_v6 }
 0x16f   :  { %v614_v2 = vadd.f32 %v613_v24, %v3613_v47  ;;  %v827_v53 = vmax.f32 %v612_v34, 0.0 }
 0x170   :  { %v615_v54 = vpop.f32.mrf.mxu0  ;;  %1769 = vmatpush2.bf16.msra.mxu1 %v3059_v31 }
 0x171   :  { %v828_v41 = vmax.f32 %v614_v2, 0.0  ;;  %v616_v42 = vadd.f32 %v615_v54, %v3616_v49  ;;  %1770 = vmatprep.subr.bf16.mxu1 %v3058_v30 }
 0x172   :  { %v3806_v52 = vpop.f32.mrf.mxu0 }
 0x173   :  { %v3808_v12 = vpack.c.bf16 %v828_v41, %v826_v27  ;;  %v829_v25 = vmax.f32 %v616_v42, 0.0 }
 0x174   :  { %v3812_v59 = vpop.f32.mrf.mxu0  ;;  %1771 = vmatpush2.bf16.msra.mxu1 %v3057_v50 }
 0x175   :  { %v3814_v60 = vpack.c.bf16 %v829_v25, %v827_v53  ;;  %1772 = vmatprep.subr.bf16.mxu1 %v3056_v44 }
 0x176   :  { %v3816_v4 = vpop.f32.mrf.mxu0 }
 0x178   :  { %v3818_v26 = vpop.f32.mrf.mxu0  ;;  %1773 = vmatpush2.bf16.msra.mxu1 %v3055_v0 }
 0x179   :  { %1774 = vmatprep.subr.bf16.mxu1 %v3054_v5 }
 0x17a   :  { %v3820_v39 = vpop.f32.mrf.mxu0 }
 0x17c   :  { %v3822_v3 = vpop.f32.mrf.mxu0  ;;  %1775 = vmatpush2.bf16.msra.mxu1 %v3053_v14 }
 0x17d   :  { %1776 = vmatprep.subr.bf16.mxu1 %v3746_v48 }
 0x17e   :  { %v3825_v7 = vpop.f32.mrf.mxu0 }
 0x180   :  { %v635_v8 = vpop.f32.mrf.mxu0  ;;  %1777 = vmatpush2.bf16.msra.mxu1 %v3740_v36 }
 0x181   :  { %1778 = vmatprep.subr.bf16.mxu1 %v3722_v1 }
 0x182   :  { %v3829_v55 = vpop.f32.mrf.mxu0 }
 0x184   :  { %v641_v62 = vpop.f32.mrf.mxu0  ;;  %1779 = vmatpush2.bf16.msra.mxu1 %v3716_v57 }
 0x186   :  { %v643_v9 = vpop.f32.mrf.mxu0 }
 0x187   :  { %1781 = vmatmul.mubr.bf16.vlgmr.msra.gmra.mxu1 %v3703_v38 }
 0x188   :  { %v645_v22 = vpop.f32.mrf.mxu0  ;;  %1821 = vmatprep.mubr.bf16.mxu1 %v1423_v61  ;;  %v636_v61 = vadd.f32 %v635_v8, %v3616_v49 }
 0x189   :  { %v646_v25 = vadd.f32 %v645_v22, %v3616_v49 }
 0x18a   :  { %v649_v48 = vpop.f32.mrf.mxu0 }
 0x18c   :  { %v651_v10 = vpop.f32.mrf.mxu0 }
 0x18d   :  { %v652_v18 = vadd.f32 %v651_v10, %v3616_v49  ;;  %v642_v10 = vadd.f32 %v641_v62, %v3616_v49 }
 0x18e   :  { %v653_v11 = vpop.f32.mrf.mxu0 }
 0x18f   :  { %v654_v63 = vadd.f32 %v653_v11, %v3613_v47  ;;  %v843_v11 = vmax.f32 %v652_v18, 0.0  ;;  %v630_v18 = vadd.f32 %v3820_v39, %v3613_v47 }
 0x190   :  { %v655_v13 = vpop.f32.mrf.mxu0 }
 0x191   :  { %v656_v54 = vadd.f32 %v655_v13, %v3616_v49  ;;  %v650_v13 = vadd.f32 %v649_v48, %v3613_v47 }
 0x192   :  { %v659_v36 = vpop.f32.mrf.mxu0 }
 0x193   :  { %v660_v42 = vadd.f32 %v659_v36, %v3613_v47  ;;  %v845_v0 = vmax.f32 %v656_v54, 0.0  ;;  %v634_v54 = vadd.f32 %v3825_v7, %v3613_v47 }
 0x194   :  { %v661_v15 = vpop.f32.mrf.mxu0 }
 0x195   :  { %v662_v34 = vadd.f32 %v661_v15, %v3616_v49  ;;  %v846_v36 = vmax.f32 %v660_v42, 0.0  ;;  %v3076_v8 = vpack.c.bf16 %v845_v0, %v843_v11 }
 0x196   :  { %v663_v1 = vpop.f32.mrf.mxu0 }
 0x197   :  { %v664_v35 = vadd.f32 %v663_v1, %v3613_v47  ;;  %v847_v50 = vmax.f32 %v662_v34, 0.0 }
 0x198   :  { %v665_v20 = vpop.f32.mrf.mxu0 }
 0x199   :  { %v666_v57 = vadd.f32 %v665_v20, %v3616_v49  ;;  %v848_v28 = vmax.f32 %v664_v35, 0.0  ;;  %v839_v35 = vmax.f32 %v642_v10, 0.0 }
 0x19a   :  { %v669_v19 = vpop.f32.mrf.mxu0 }
 0x19b   :  { %v670_v29 = vadd.f32 %v669_v19, %v3613_v47  ;;  %v849_v21 = vmax.f32 %v666_v57, 0.0  ;;  %v644_v19 = vadd.f32 %v643_v9, %v3613_v47  ;;  %v3077_v57 = vpack.c.bf16 %v848_v28, %v846_v36 }
 0x19c   :  { %v671_v23 = vpop.f32.mrf.mxu0 }
 0x19d   :  { %v672_v37 = vadd.f32 %v671_v23, %v3616_v49  ;;  %v850_v33 = vmax.f32 %v670_v29, 0.0  ;;  %v3078_v5 = vpack.c.bf16 %v849_v21, %v847_v50  ;;  %v841_v23 = vmax.f32 %v646_v25, 0.0 }
 0x19e   :  { %v673_v31 = vpop.f32.mrf.mxu0  ;;  %v640_v29 = vadd.f32 %v3829_v55, %v3613_v47  ;;  %v840_v21 = vmax.f32 %v644_v19, 0.0 }
 0x19f   :  { %v674_v24 = vadd.f32 %v673_v31, %v3613_v47  ;;  %v851_v27 = vmax.f32 %v672_v37, 0.0  ;;  %v844_v31 = vmax.f32 %v654_v63, 0.0  ;;  %v3074_v42 = vpack.c.bf16 %v841_v23, %v839_v35 }
 0x1a0   :  { %v675_v30 = vpop.f32.mrf.mxu0  ;;  %v838_v50 = vmax.f32 %v640_v29, 0.0  ;;  %v624_v63 = vadd.f32 %v3816_v4, %v3613_v47 }
 0x1a1   :  { %v676_v2 = vadd.f32 %v675_v30, %v3616_v49  ;;  %v852_v32 = vmax.f32 %v674_v24, 0.0  ;;  %v842_v30 = vmax.f32 %v650_v13, 0.0 }
 0x1a2   :  { %v679_v16 = vpop.f32.mrf.mxu0  ;;  %v832_v4 = vmax.f32 %v624_v63, 0.0 }
 0x1a3   :  { %v853_v41 = vmax.f32 %v676_v2, 0.0  ;;  %v680_v53 = vadd.f32 %v679_v16, %v3613_v47  ;;  %v3079_v17 = vpack.c.bf16 %v852_v32, %v850_v33  ;;  %v632_v2 = vadd.f32 %v3822_v3, %v3616_v49 }
 0x1a4   :  { %v681_v45 = vpop.f32.mrf.mxu0  ;;  %v626_v16 = vadd.f32 %v3818_v26, %v3616_v49  ;;  %v3075_v55 = vpack.c.bf16 %v844_v31, %v842_v30 }
 0x1a5   :  { %v3080_v44 = vpack.c.bf16 %v853_v41, %v851_v27  ;;  %v682_v6 = vadd.f32 %v681_v45, %v3616_v49  ;;  %v854_v15 = vmax.f32 %v680_v53, 0.0  ;;  %v837_v41 = vmax.f32 %v636_v61, 0.0 }
 0x1a6   :  { %v683_v51 = vpop.f32.mrf.mxu0  ;;  %v622_v45 = vadd.f32 %v3812_v59, %v3616_v49  ;;  %v833_v28 = vmax.f32 %v626_v16, 0.0  ;;  %v834_v61 = vmax.f32 %v630_v18, 0.0 }
 0x1a7   :  { %v684_v14 = vadd.f32 %v683_v51, %v3613_v47  ;;  %1789 = vmatprep.subr.bf16.mxu1 %v3080_v44  ;;  %v855_v24 = vmax.f32 %v682_v6, 0.0  ;;  %v835_v44 = vmax.f32 %v632_v2, 0.0  ;;  %v3073_v51 = vpack.c.bf16 %v840_v21, %v838_v50 }
 0x1a8   :  { %v685_v22 = vpop.f32.mrf.mxu0  ;;  %1790 = vmatpush1.bf16.msra.mxu1 %v3079_v17  ;;  %v836_v17 = vmax.f32 %v634_v54, 0.0  ;;  %v831_v13 = vmax.f32 %v622_v45, 0.0 }
 0x1a9   :  { %v856_v1 = vmax.f32 %v684_v14, 0.0  ;;  %v686_v20 = vadd.f32 %v685_v22, %v3616_v49  ;;  %1791 = vmatprep.subr.bf16.mxu1 %v3078_v5  ;;  %v3072_v59 = vpack.c.bf16 %v837_v41, %v835_v44  ;;  %v620_v14 = vadd.f32 %v3806_v52, %v3613_v47 }
 0x1aa   :  { %v689_v37 = vpop.f32.mrf.mxu0  ;;  %v3071_v22 = vpack.c.bf16 %v836_v17, %v834_v61 }
 0x1ab   :  { %v3855_v62 = vpack.c.bf16 %v856_v1, %v854_v15  ;;  %v857_v48 = vmax.f32 %v686_v20, 0.0  ;;  %v690_v32 = vadd.f32 %v689_v37, %v3613_v47  ;;  %v3070_v15 = vpack.c.bf16 %v833_v28, %v831_v13 }
 0x1ac   :  { %v691_v34 = vpop.f32.mrf.mxu0  ;;  %1792 = vmatpush1.bf16.msra.mxu1 %v3077_v57  ;;  %v830_v1 = vmax.f32 %v620_v14, 0.0 }
 0x1ad   :  { %v3861_v9 = vpack.c.bf16 %v857_v48, %v855_v24  ;;  %1793 = vmatprep.subr.bf16.mxu1 %v3076_v8  ;;  %v692_v33 = vadd.f32 %v691_v34, %v3616_v49  ;;  %v858_v7 = vmax.f32 %v690_v32, 0.0 }
 0x1ae   :  { %v693_v27 = vpop.f32.mrf.mxu0  ;;  %v3069_v19 = vpack.c.bf16 %v832_v4, %v830_v1 }
 0x1af   :  { %v694_v3 = vadd.f32 %v693_v27, %v3613_v47  ;;  %v859_v5 = vmax.f32 %v692_v33, 0.0 }
 0x1b0   :  { %v695_v26 = vpop.f32.mrf.mxu0  ;;  %1794 = vmatpush1.bf16.msra.mxu1 %v3075_v55 }
 0x1b1   :  { %v860_v53 = vmax.f32 %v694_v3, 0.0  ;;  %v696_v25 = vadd.f32 %v695_v26, %v3616_v49  ;;  %1795 = vmatprep.subr.bf16.mxu1 %v3074_v42 }
 0x1b2   :  { %v3877_v0 = vpop.f32.mrf.mxu0 }
 0x1b3   :  { %v3879_v39 = vpack.c.bf16 %v860_v53, %v858_v7  ;;  %v861_v6 = vmax.f32 %v696_v25, 0.0 }
 0x1b4   :  { %v3883_v10 = vpop.f32.mrf.mxu0  ;;  %1796 = vmatpush1.bf16.msra.mxu1 %v3073_v51 }
 0x1b5   :  { %v3885_v36 = vpack.c.bf16 %v861_v6, %v859_v5  ;;  %1797 = vmatprep.subr.bf16.mxu1 %v3072_v59 }
 0x1b6   :  { %v3887_v11 = vpop.f32.mrf.mxu0 }
 0x1b8   :  { %v3889_v20 = vpop.f32.mrf.mxu0  ;;  %1798 = vmatpush1.bf16.msra.mxu1 %v3071_v22 }
 0x1b9   :  { %1799 = vmatprep.subr.bf16.mxu1 %v3070_v15 }
 0x1ba   :  { %v3891_v52 = vpop.f32.mrf.mxu0 }
 0x1bc   :  { %v3893_v23 = vpop.f32.mrf.mxu0  ;;  %1800 = vmatpush1.bf16.msra.mxu1 %v3069_v19 }
 0x1bd   :  { %1801 = vmatprep.subr.bf16.mxu1 %v3814_v60 }
 0x1be   :  { %v3896_v31 = vpop.f32.mrf.mxu0 }
 0x1c0   :  { %v715_v57 = vpop.f32.mrf.mxu0  ;;  %1802 = vmatpush1.bf16.msra.mxu1 %v3808_v12 }
 0x1c1   :  { %1803 = vmatprep.subr.bf16.mxu1 %v3790_v58 }
 0x1c2   :  { %v719_v37 = vpop.f32.mrf.mxu0 }
 0x1c4   :  { %v721_v8 = vpop.f32.mrf.mxu0  ;;  %1804 = vmatpush1.bf16.msra.mxu1 %v3784_v56 }
 0x1c5   :  { %v722_v4 = vadd.f32 %v721_v8, %v3616_v49  ;;  %v714_v8 = vadd.f32 %v3896_v31, %v3613_v47  ;;  %v704_v31 = vadd.f32 %v3887_v11, %v3613_v47  ;;  %v3158_v11 = vld [vmem:[%s4260_s4 + $0x70] ss:$8 sps:$4 sm:$0xff]  }
 0x1c6   :  { %v723_v24 = vpop.f32.mrf.mxu0 }
 0x1c7   :  { %v724_v15 = vadd.f32 %v723_v24, %v3613_v47 }
 0x1c8   :  { %v725_v48 = vpop.f32.mrf.mxu0 }
 0x1c9   :  { %v726_v5 = vadd.f32 %v725_v48, %v3616_v49  ;;  %v720_v48 = vadd.f32 %v719_v37, %v3613_v47  ;;  %v710_v37 = vadd.f32 %v3891_v52, %v3613_v47 }
 0x1ca   :  { %v729_v29 = vpop.f32.mrf.mxu0 }
 0x1cb   :  { %v730_v61 = vadd.f32 %v729_v29, %v3613_v47  ;;  %v712_v29 = vadd.f32 %v3893_v23, %v3616_v49  ;;  %v702_v23 = vadd.f32 %v3883_v10, %v3616_v49 }
 0x1cc   :  { %v731_v30 = vpop.f32.mrf.mxu0 }
 0x1cd   :  { %v732_v25 = vadd.f32 %v731_v30, %v3616_v49  ;;  %v716_v30 = vadd.f32 %v715_v57, %v3616_v49  ;;  %v863_v52 = vmax.f32 %v702_v23, 0.0 }
 0x1ce   :  { %v733_v34 = vpop.f32.mrf.mxu0 }
 0x1cf   :  { %v734_v17 = vadd.f32 %v733_v34, %v3613_v47  ;;  %v875_v22 = vmax.f32 %v732_v25, 0.0  ;;  %v873_v34 = vmax.f32 %v726_v5, 0.0  ;;  %v869_v57 = vmax.f32 %v716_v30, 0.0  ;;  %v3181_v25 = vld [vmem:[%s4260_s4 + $0x4] ss:$8 sps:$4 sm:$0xff]  }
 0x1d0   :  { %v735_v2 = vpop.f32.mrf.mxu0  ;;  %v3190_v5 = vld [vmem:[%s4260_s4 + $0xd4] ss:$8 sps:$4 sm:$0xff]  }
 0x1d1   :  { %v736_v18 = vadd.f32 %v735_v2, %v3616_v49  ;;  %v876_v1 = vmax.f32 %v734_v17, 0.0  ;;  %v3182_v17 = vld [vmem:[%s4260_s4 + $0xf0] ss:$8 sps:$4 sm:$0xff]  }
 0x1d2   :  { %v739_v35 = vpop.f32.mrf.mxu0 }
 0x1d3   :  { %v740_v7 = vadd.f32 %v739_v35, %v3613_v47  ;;  %v877_v6 = vmax.f32 %v736_v18, 0.0  ;;  %v874_v35 = vmax.f32 %v730_v61, 0.0  ;;  %v3172_v18 = vld [vmem:[%s4260_s4 + $0x34] ss:$8 sps:$4 sm:$0xff]   ;;  %v3191_v61 = vld [vmem:[%s4260_s4 + $0xc0] ss:$8 sps:$4 sm:$0xff]  }
 0x1d4   :  { %v741_v32 = vpop.f32.mrf.mxu0 }
 0x1d5   :  { %v742_v42 = vadd.f32 %v741_v32, %v3616_v49  ;;  %v878_v13 = vmax.f32 %v740_v7, 0.0  ;;  %v3092_v2 = vpack.c.bf16 %v877_v6, %v875_v22  ;;  %v871_v32 = vmax.f32 %v722_v4, 0.0  ;;  %v3178_v7 = vld [vmem:[%s4260_s4 + $0x14] ss:$8 sps:$4 sm:$0xff]   ;;  %v3188_v6 = vld [vmem:[%s4260_s4 + $0xd0] ss:$8 sps:$4 sm:$0xff]  }
 0x1d6   :  { %v743_v60 = vpop.f32.mrf.mxu0  ;;  %v3091_v24 = vpack.c.bf16 %v876_v1, %v874_v35  ;;  %v3194_v4 = vld [vmem:[%s4260_s4 + $0xb0] ss:$8 sps:$4 sm:$0xff]   ;;  %v3199_v22 = vld [vmem:[%s4260_s4 + $0xa4] ss:$8 sps:$4 sm:$0xff]   ;;  %v3202_v1 = vld [vmem:[%s4260_s4 + $0x94] ss:$8 sps:$4 sm:$0xff]  }
 0x1d7   :  { %v744_v3 = vadd.f32 %v743_v60, %v3613_v47  ;;  %v879_v63 = vmax.f32 %v742_v42, 0.0  ;;  %v872_v60 = vmax.f32 %v724_v15, 0.0  ;;  %v864_v42 = vmax.f32 %v704_v31, 0.0  ;;  %v3197_v15 = vld [vmem:[%s4260_s4 + $0xa0] ss:$8 sps:$4 sm:$0xff]  }
 0x1d8   :  { %v745_v16 = vpop.f32.mrf.mxu0 }
 0x1d9   :  { %v746_v12 = vadd.f32 %v745_v16, %v3616_v49  ;;  %v880_v51 = vmax.f32 %v744_v3, 0.0  ;;  %v706_v16 = vadd.f32 %v3889_v20, %v3616_v49  ;;  %v700_v20 = vadd.f32 %v3877_v0, %v3613_v47 }
 0x1da   :  { %v749_v54 = vpop.f32.mrf.mxu0  ;;  %v1422_v0 = vcombine.high %v3703_v38, %v3703_v38  ;;  %v3166_v38 = vld [vmem:[%s4260_s4 + $0x54] ss:$8 sps:$4 sm:$0xff]  }
 0x1db   :  { %v750_v56 = vadd.f32 %v749_v54, %v3613_v47  ;;  %v881_v50 = vmax.f32 %v746_v12, 0.0  ;;  %v3093_v19 = vpack.c.bf16 %v880_v51, %v878_v13  ;;  %v3090_v54 = vpack.c.bf16 %v873_v34, %v871_v32  ;;  %v3187_v51 = vld [vmem:[%s4260_s4 + $0xe4] ss:$8 sps:$4 sm:$0xff]   ;;  %v3196_v13 = vld [vmem:[%s4260_s4 + $0xb4] ss:$8 sps:$4 sm:$0xff]  }
 0x1dc   :  { %v751_v21 = vpop.f32.mrf.mxu0  ;;  %v868_v12 = vmax.f32 %v714_v8, 0.0  ;;  %v3208_v32 = vld [vmem:[%s4262_s6 + $0x74] ss:$8 sps:$4 sm:$0xff]   ;;  %v3215_v8 = vld [vmem:[%s4264_s8 + $0x70] ss:$8 sps:$4 sm:$0xff]  }
 0x1dd   :  { %v752_v58 = vadd.f32 %v751_v21, %v3616_v49  ;;  %v882_v53 = vmax.f32 %v750_v56, 0.0  ;;  %v3094_v14 = vpack.c.bf16 %v881_v50, %v879_v63  ;;  %v870_v21 = vmax.f32 %v720_v48, 0.0  ;;  %v3170_v50 = vld [vmem:[%s4260_s4 + $0x30] ss:$8 sps:$4 sm:$0xff]   ;;  %v3179_v63 = vld [vmem:[%s4260_s4] ss:$8 sps:$4 sm:$0xff]  }
 0x1de   :  { %v753_v55 = vpop.f32.mrf.mxu0  ;;  %v3203_v48 = vld [vmem:[%s4260_s4 + $0x80] ss:$8 sps:$4 sm:$0xff]  }
 0x1df   :  { %v754_v27 = vadd.f32 %v753_v55, %v3613_v47  ;;  %v883_v26 = vmax.f32 %v752_v58, 0.0  ;;  %v867_v55 = vmax.f32 %v712_v29, 0.0  ;;  %v3089_v58 = vpack.c.bf16 %v872_v60, %v870_v21  ;;  %v3160_v47 = vld [vmem:[%s4260_s4 + $0x74] ss:$8 sps:$4 sm:$0xff]  }
 0x1e0   :  { %v755_v41 = vpop.f32.mrf.mxu0  ;;  %v3217_v60 = vld [vmem:[%s4264_s8 + $0x74] ss:$8 sps:$4 sm:$0xff]  }
 0x1e1   :  { %v756_v33 = vadd.f32 %v755_v41, %v3616_v49  ;;  %v884_v45 = vmax.f32 %v754_v27, 0.0  ;;  %v865_v27 = vmax.f32 %v706_v16, 0.0  ;;  %v3088_v56 = vpack.c.bf16 %v869_v57, %v867_v55  ;;  %2532 = vmatprep.subr.bf16.mxu0 %v3217_v60  ;;  %v3232_v16 = vld [vmem:[%s4264_s8 + $0x64] ss:$8 sps:$4 sm:$0xff]   ;;  %v3245_v57 = vld [vmem:[%s4264_s8 + $0x50] ss:$8 sps:$4 sm:$0xff]  }
 0x1e2   :  { %v866_v41 = vmax.f32 %v710_v37, 0.0  ;;  %v862_v49 = vmax.f32 %v700_v20, 0.0  ;;  %2533 = vmatpush1.bf16.msra.mxu0 %v3215_v8  ;;  %v3211_v20 = vld [vmem:[%s4262_s6 + $0x64] ss:$8 sps:$4 sm:$0xff]   ;;  %v3287_v60 = vld [vmem:[%s4264_s8 + $0xc0] ss:$8 sps:$4 sm:$0xff]  }
 0x1e3   :  { %v885_v44 = vmax.f32 %v756_v33, 0.0  ;;  %v3095_v59 = vpack.c.bf16 %v884_v45, %v882_v53  ;;  %v3086_v3 = vpack.c.bf16 %v865_v27, %v863_v52  ;;  %v3167_v45 = vld [vmem:[%s4260_s4 + $0x40] ss:$8 sps:$4 sm:$0xff]   ;;  %v3176_v53 = vld [vmem:[%s4260_s4 + $0x10] ss:$8 sps:$4 sm:$0xff]   ;;  %2534 = vmatprep.subr.bf16.mxu0 %v3232_v16 }
 0x1e4   :  { %v3087_v33 = vpack.c.bf16 %v868_v12, %v866_v41  ;;  %v3085_v10 = vpack.c.bf16 %v864_v42, %v862_v49  ;;  %v3209_v41 = vld [vmem:[%s4262_s6 + $0x60] ss:$8 sps:$4 sm:$0xff]   ;;  %v3214_v52 = vld [vmem:[%s4262_s6 + $0x54] ss:$8 sps:$4 sm:$0xff]   ;;  %v3212_v42 = vld [vmem:[%s4262_s6 + $0x50] ss:$8 sps:$4 sm:$0xff]  }
 0x1e5   :  { %v3096_v28 = vpack.c.bf16 %v885_v44, %v883_v26  ;;  %v3175_v26 = vld [vmem:[%s4260_s4 + $0x24] ss:$8 sps:$4 sm:$0xff]   ;;  %v3173_v44 = vld [vmem:[%s4260_s4 + $0x20] ss:$8 sps:$4 sm:$0xff]   ;;  %v3223_v49 = vld [vmem:[%s4262_s6 + $0x34] ss:$8 sps:$4 sm:$0xff]  }
 0x1e6   :  { %v3289_v8 = vld [vmem:[%s4264_s8 + $0xc4] ss:$8 sps:$4 sm:$0xff]   ;;  %v3290_v16 = vld [vmem:[%s4264_s8 + $0xb0] ss:$8 sps:$4 sm:$0xff]  }
 0x1e7   :  { %1805 = vmatprep.subr.bf16.mxu1 %v3096_v28  ;;  %v3184_v28 = vld [vmem:[%s4260_s4 + $0xf4] ss:$8 sps:$4 sm:$0xff]  }
 0x1e8   :  { %1806 = vmatpush2.bf16.msra.mxu1 %v3095_v59  ;;  %v3185_v59 = vld [vmem:[%s4260_s4 + $0xe0] ss:$8 sps:$4 sm:$0xff]  }
 0x1e9   :  { %1807 = vmatprep.subr.bf16.mxu1 %v3094_v14  ;;  %v3193_v14 = vld [vmem:[%s4260_s4 + $0xc4] ss:$8 sps:$4 sm:$0xff]  }
 0x1ec   :  { %1808 = vmatpush2.bf16.msra.mxu1 %v3093_v19  ;;  %v3200_v19 = vld [vmem:[%s4260_s4 + $0x90] ss:$8 sps:$4 sm:$0xff]  }
 0x1ed   :  { %1809 = vmatprep.subr.bf16.mxu1 %v3092_v2  ;;  %v3205_v2 = vld [vmem:[%s4260_s4 + $0x84] ss:$8 sps:$4 sm:$0xff]  }
 0x1f0   :  { %1810 = vmatpush2.bf16.msra.mxu1 %v3091_v24  ;;  %v3230_v24 = vld [vmem:[%s4264_s8 + $0x60] ss:$8 sps:$4 sm:$0xff]  }
 0x1f1   :  { %1811 = vmatprep.subr.bf16.mxu1 %v3090_v54  ;;  %2535 = vmatpush1.bf16.msra.mxu0 %v3230_v24  ;;  %v3247_v54 = vld [vmem:[%s4264_s8 + $0x54] ss:$8 sps:$4 sm:$0xff]  }
 0x1f2   :  { %2536 = vmatprep.subr.bf16.mxu0 %v3247_v54  ;;  %v3292_v24 = vld [vmem:[%s4264_s8 + $0xb4] ss:$8 sps:$4 sm:$0xff]   ;;  %v3293_v54 = vld [vmem:[%s4264_s8 + $0xa0] ss:$8 sps:$4 sm:$0xff]  }
 0x1f4   :  { %1812 = vmatpush2.bf16.msra.mxu1 %v3089_v58  ;;  %v3206_v58 = vld [vmem:[%s4262_s6 + $0x70] ss:$8 sps:$4 sm:$0xff]  }
 0x1f5   :  { %1813 = vmatprep.subr.bf16.mxu1 %v3088_v56  ;;  %2537 = vmatpush1.bf16.msra.mxu0 %v3245_v57  ;;  %v3295_v57 = vld [vmem:[%s4264_s8 + $0xa4] ss:$8 sps:$4 sm:$0xff]  }
 0x1f8   :  { %1814 = vmatpush2.bf16.msra.mxu1 %v3087_v33  ;;  %v3220_v33 = vld [vmem:[%s4262_s6 + $0x44] ss:$8 sps:$4 sm:$0xff]  }
 0x1f9   :  { %1815 = vmatprep.subr.bf16.mxu1 %v3086_v3  ;;  %v3218_v3 = vld [vmem:[%s4262_s6 + $0x40] ss:$8 sps:$4 sm:$0xff]  }
 0x1fc   :  { %1816 = vmatpush2.bf16.msra.mxu1 %v3085_v10  ;;  %v3221_v10 = vld [vmem:[%s4262_s6 + $0x30] ss:$8 sps:$4 sm:$0xff]  }
 0x1fd   :  { %1817 = vmatprep.subr.bf16.mxu1 %v3885_v36  ;;  %v3169_v36 = vld [vmem:[%s4260_s4 + $0x44] ss:$8 sps:$4 sm:$0xff]  }
 0x200   :  { %1818 = vmatpush2.bf16.msra.mxu1 %v3879_v39  ;;  %v3163_v39 = vld [vmem:[%s4260_s4 + $0x64] ss:$8 sps:$4 sm:$0xff]  }
 0x201   :  { %1819 = vmatprep.subr.bf16.mxu1 %v3861_v9  ;;  %v3161_v9 = vld [vmem:[%s4260_s4 + $0x60] ss:$8 sps:$4 sm:$0xff]  }
 0x204   :  { %1820 = vmatpush2.bf16.msra.mxu1 %v3855_v62  ;;  %v3164_v62 = vld [vmem:[%s4260_s4 + $0x50] ss:$8 sps:$4 sm:$0xff]  }
 0x205   :  { %2036 = vmatprep.subr.bf16.mxu1 %v3160_v47  ;;  %v3226_v47 = vld [vmem:[%s4262_s6 + $0x24] ss:$8 sps:$4 sm:$0xff]  }
 0x207   :  { %1822 = vmatmul.mubr.bf16.vlgmr.msra.gmra.mxu1 %v1422_v0  ;;  %v3224_v0 = vld [vmem:[%s4262_s6 + $0x20] ss:$8 sps:$4 sm:$0xff]  }
 0x208   :  { %2037 = vmatpush1.bf16.msra.mxu1 %v3158_v11  ;;  %v3229_v11 = vld [vmem:[%s4262_s6 + $0x14] ss:$8 sps:$4 sm:$0xff]  }
 0x209   :  { %2038 = vmatprep.subr.bf16.mxu1 %v3163_v39  ;;  %v3227_v39 = vld [vmem:[%s4262_s6 + $0x10] ss:$8 sps:$4 sm:$0xff]  }
 0x20c   :  { %2039 = vmatpush1.bf16.msra.mxu1 %v3161_v9  ;;  %v3235_v9 = vld [vmem:[%s4262_s6 + $0x4] ss:$8 sps:$4 sm:$0xff]  }
 0x20d   :  { %2040 = vmatprep.subr.bf16.mxu1 %v3166_v38  ;;  %v3233_v38 = vld [vmem:[%s4262_s6] ss:$8 sps:$4 sm:$0xff]  }
 0x210   :  { %2041 = vmatpush1.bf16.msra.mxu1 %v3164_v62  ;;  %v3238_v62 = vld [vmem:[%s4262_s6 + $0xf4] ss:$8 sps:$4 sm:$0xff]  }
 0x211   :  { %2042 = vmatprep.subr.bf16.mxu1 %v3169_v36  ;;  %v3236_v36 = vld [vmem:[%s4262_s6 + $0xf0] ss:$8 sps:$4 sm:$0xff]  }
 0x214   :  { %2043 = vmatpush1.bf16.msra.mxu1 %v3167_v45  ;;  %v3241_v45 = vld [vmem:[%s4262_s6 + $0xe4] ss:$8 sps:$4 sm:$0xff]  }
 0x215   :  { %2044 = vmatprep.subr.bf16.mxu1 %v3172_v18  ;;  %v3239_v18 = vld [vmem:[%s4262_s6 + $0xe0] ss:$8 sps:$4 sm:$0xff]  }
 0x218   :  { %2045 = vmatpush1.bf16.msra.mxu1 %v3170_v50  ;;  %v3244_v50 = vld [vmem:[%s4262_s6 + $0xd4] ss:$8 sps:$4 sm:$0xff]  }
 0x219   :  { %2046 = vmatprep.subr.bf16.mxu1 %v3175_v26  ;;  %v3242_v26 = vld [vmem:[%s4262_s6 + $0xd0] ss:$8 sps:$4 sm:$0xff]  }
 0x21c   :  { %2047 = vmatpush1.bf16.msra.mxu1 %v3173_v44  ;;  %v3250_v44 = vld [vmem:[%s4262_s6 + $0xc4] ss:$8 sps:$4 sm:$0xff]  }
 0x21d   :  { %2048 = vmatprep.subr.bf16.mxu1 %v3178_v7  ;;  %v3248_v7 = vld [vmem:[%s4262_s6 + $0xc0] ss:$8 sps:$4 sm:$0xff]  }
 0x220   :  { %2049 = vmatpush1.bf16.msra.mxu1 %v3176_v53  ;;  %v3253_v53 = vld [vmem:[%s4262_s6 + $0xb4] ss:$8 sps:$4 sm:$0xff]  }
 0x221   :  { %2050 = vmatprep.subr.bf16.mxu1 %v3181_v25  ;;  %v3251_v25 = vld [vmem:[%s4262_s6 + $0xb0] ss:$8 sps:$4 sm:$0xff]  }
 0x224   :  { %2051 = vmatpush1.bf16.msra.mxu1 %v3179_v63  ;;  %v3256_v63 = vld [vmem:[%s4262_s6 + $0xa4] ss:$8 sps:$4 sm:$0xff]  }
 0x225   :  { %2052 = vmatprep.subr.bf16.mxu1 %v3184_v28  ;;  %v3254_v28 = vld [vmem:[%s4262_s6 + $0xa0] ss:$8 sps:$4 sm:$0xff]  }
 0x228   :  { %2053 = vmatpush2.bf16.msra.mxu1 %v3182_v17  ;;  %v3259_v17 = vld [vmem:[%s4262_s6 + $0x94] ss:$8 sps:$4 sm:$0xff]  }
 0x229   :  { %2054 = vmatprep.subr.bf16.mxu1 %v3187_v51  ;;  %v3257_v51 = vld [vmem:[%s4262_s6 + $0x90] ss:$8 sps:$4 sm:$0xff]  }
 0x22c   :  { %2055 = vmatpush2.bf16.msra.mxu1 %v3185_v59  ;;  %v3265_v59 = vld [vmem:[%s4262_s6 + $0x84] ss:$8 sps:$4 sm:$0xff]  }
 0x22d   :  { %2056 = vmatprep.subr.bf16.mxu1 %v3190_v5  ;;  %v3260_v5 = vld [vmem:[%s4264_s8 + $0x40] ss:$8 sps:$4 sm:$0xff]  }
 0x230   :  { %2057 = vmatpush2.bf16.msra.mxu1 %v3188_v6  ;;  %v3262_v6 = vld [vmem:[%s4264_s8 + $0x44] ss:$8 sps:$4 sm:$0xff]  }
 0x231   :  { %2058 = vmatprep.subr.bf16.mxu1 %v3193_v14  ;;  %v3263_v14 = vld [vmem:[%s4262_s6 + $0x80] ss:$8 sps:$4 sm:$0xff]   ;;  %2538 = vmatprep.subr.bf16.mxu0 %v3262_v6 }
 0x232   :  { %2539 = vmatpush1.bf16.msra.mxu0 %v3260_v5 }
 0x234   :  { %2059 = vmatpush2.bf16.msra.mxu1 %v3191_v61  ;;  %v3266_v61 = vld [vmem:[%s4264_s8 + $0x30] ss:$8 sps:$4 sm:$0xff]  }
 0x235   :  { %2060 = vmatprep.subr.bf16.mxu1 %v3196_v13  ;;  %v3268_v13 = vld [vmem:[%s4264_s8 + $0x34] ss:$8 sps:$4 sm:$0xff]  }
 0x236   :  { %2540 = vmatprep.subr.bf16.mxu0 %v3268_v13 }
 0x237   :  { %2541 = vmatpush1.bf16.msra.mxu0 %v3266_v61 }
 0x238   :  { %2061 = vmatpush2.bf16.msra.mxu1 %v3194_v4  ;;  %v3271_v4 = vld [vmem:[%s4264_s8 + $0x24] ss:$8 sps:$4 sm:$0xff]  }
 0x239   :  { %2062 = vmatprep.subr.bf16.mxu1 %v3199_v22  ;;  %v3269_v22 = vld [vmem:[%s4264_s8 + $0x20] ss:$8 sps:$4 sm:$0xff]   ;;  %2542 = vmatprep.subr.bf16.mxu0 %v3271_v4 }
 0x23b   :  { %2543 = vmatpush1.bf16.msra.mxu0 %v3269_v22 }
 0x23c   :  { %2063 = vmatpush2.bf16.msra.mxu1 %v3197_v15  ;;  %v3274_v15 = vld [vmem:[%s4264_s8 + $0x14] ss:$8 sps:$4 sm:$0xff]  }
 0x23d   :  { %2064 = vmatprep.subr.bf16.mxu1 %v3202_v1  ;;  %v3272_v1 = vld [vmem:[%s4264_s8 + $0x10] ss:$8 sps:$4 sm:$0xff]   ;;  %2544 = vmatprep.subr.bf16.mxu0 %v3274_v15 }
 0x23f   :  { %2545 = vmatpush1.bf16.msra.mxu0 %v3272_v1 }
 0x240   :  { %2065 = vmatpush2.bf16.msra.mxu1 %v3200_v19  ;;  %v3277_v19 = vld [vmem:[%s4264_s8 + $0x4] ss:$8 sps:$4 sm:$0xff]  }
 0x241   :  { %2066 = vmatprep.subr.bf16.mxu1 %v3205_v2  ;;  %2546 = vmatprep.subr.bf16.mxu0 %v3277_v19  ;;  %v3278_v2 = vld [vmem:[%s4264_s8 + $0xf0] ss:$8 sps:$4 sm:$0xff]  }
 0x244   :  { %2067 = vmatpush2.bf16.msra.mxu1 %v3203_v48  ;;  %v3283_v48 = vld [vmem:[%s4264_s8 + $0xe4] ss:$8 sps:$4 sm:$0xff]  }
 0x245   :  { %2283 = vmatprep.subr.bf16.mxu1 %v3208_v32  ;;  %v3284_v32 = vld [vmem:[%s4264_s8 + $0xd0] ss:$8 sps:$4 sm:$0xff]  }
 0x247   :  { %v1782_v30 = vpop.f32.mrf.mxu1 }
 0x249   :  { %v1784_v34 = vpop.f32.mrf.mxu1 }
 0x24b   :  { %v1786_v35 = vpop.f32.mrf.mxu1 }
 0x24c   :  { %v3281_v35 = vld [vmem:[%s4264_s8 + $0xe0] ss:$8 sps:$4 sm:$0xff]  }
 0x24d   :  { %v1787_v29 = vpop.f32.mrf.mxu1 }
 0x24e   :  { %v3286_v29 = vld [vmem:[%s4264_s8 + $0xd4] ss:$8 sps:$4 sm:$0xff]  }
 0x2c7   :  { %v1823_v37 = vpop.f32.mrf.mxu1 }
 0x2c8   :  { %v1824_v21 = vadd.f32 %v1823_v37, %v1782_v30  ;;  %v3275_v30 = vld [vmem:[%s4264_s8] ss:$8 sps:$4 sm:$0xff]   ;;  %v3298_v37 = vld [vmem:[%s4264_s8 + $0x94] ss:$8 sps:$4 sm:$0xff]  }
 0x2c9   :  { %v1825_v23 = vpop.f32.mrf.mxu1  ;;  %2547 = vmatpush1.bf16.msra.mxu0 %v3275_v30 }
 0x2ca   :  { %v1826_v55 = vadd.f32 %v1825_v23, %v1784_v34  ;;  %v1830_v27 = vpack.c.bf16 %v1824_v21, %v1824_v21  ;;  %v3280_v34 = vld [vmem:[%s4264_s8 + $0xf4] ss:$8 sps:$4 sm:$0xff]   ;;  %v3296_v21 = vld [vmem:[%s4264_s8 + $0x90] ss:$8 sps:$4 sm:$0xff]   ;;  %v3301_v23 = vld [vmem:[%s4264_s8 + $0x84] ss:$8 sps:$4 sm:$0xff]  }
 0x2cb   :  { %v1827_v31 = vpop.f32.mrf.mxu1  ;;  %2548 = vmatprep.subr.bf16.mxu0 %v3280_v34  ;;  %v2574_v34 = vand.u32 127, %v123_v40 }
 0x2cc   :  { %v1831_v12 = vpack.c.bf16 %v1826_v55, %v1826_v55  ;;  %v3299_v55 = vld [vmem:[%s4264_s8 + $0x80] ss:$8 sps:$4 sm:$0xff]  }
 0x2cd   :  { %v1828_v56 = vpop.f32.mrf.mxu1  ;;  %2549 = vmatpush2.bf16.msra.mxu0 %v3278_v2  ;;  %v1864_v31 = vld [vmem:[%s4261_s5] sm:$0x3]  ;;  %vm2575_vm1 = vcmp.lt.s32.totalorder %v2574_v34, 8 }
 0x2ce   :  { %2068 = vmatprep.mubr.bf16.mxu1 %v1831_v12  ;;  %2550 = vmatprep.subr.bf16.mxu0 %v3283_v48  ;;  %v1869_v12 = vrot.slane %v1864_v31, %v3601_v43 }
 0x2cf   :  { %2069 = vmatmul.mubr.bf16.vlgmr.msra.gmra.mxu1 %v1830_v27 }
 0x2d0   :  { %2284 = vmatpush1.bf16.msra.mxu1 %v3206_v58  ;;  %v1873_v58 = vrot.slane %v1864_v31, %v3610_v46 }
 0x2d1   :  { %2285 = vmatprep.subr.bf16.mxu1 %v3211_v20  ;;  %2551 = vmatpush2.bf16.msra.mxu0 %v3281_v35 }
 0x2d2   :  { %2552 = vmatprep.subr.bf16.mxu0 %v3286_v29 }
 0x2d4   :  { %2286 = vmatpush1.bf16.msra.mxu1 %v3209_v41 }
 0x2d5   :  { %2287 = vmatprep.subr.bf16.mxu1 %v3214_v52  ;;  %2553 = vmatpush2.bf16.msra.mxu0 %v3284_v32 }
 0x2d6   :  { %2554 = vmatprep.subr.bf16.mxu0 %v3289_v8 }
 0x2d8   :  { %2288 = vmatpush1.bf16.msra.mxu1 %v3212_v42 }
 0x2d9   :  { %2289 = vmatprep.subr.bf16.mxu1 %v3220_v33  ;;  %2555 = vmatpush2.bf16.msra.mxu0 %v3287_v60 }
 0x2da   :  { %2556 = vmatprep.subr.bf16.mxu0 %v3292_v24 }
 0x2dc   :  { %2290 = vmatpush1.bf16.msra.mxu1 %v3218_v3 }
 0x2dd   :  { %2291 = vmatprep.subr.bf16.mxu1 %v3223_v49  ;;  %2557 = vmatpush2.bf16.msra.mxu0 %v3290_v16  ;;  %v2111_v49 = vld [vmem:[%s4263_s7] sm:$0x3]  ;;  %s3384_s7 = smov [#allocation5]  }
 0x2de   :  { %2558 = vmatprep.subr.bf16.mxu0 %v3295_v57 }
 0x2e0   :  { %2292 = vmatpush1.bf16.msra.mxu1 %v3221_v10  ;;  %v2116_v10 = vrot.slane %v2111_v49, %v3601_v43 }
 0x2e1   :  { %2293 = vmatprep.subr.bf16.mxu1 %v3226_v47  ;;  %2559 = vmatpush2.bf16.msra.mxu0 %v3293_v54  ;;  %v2120_v47 = vrot.slane %v2111_v49, %v3610_v46 }
 0x2e2   :  { %2560 = vmatprep.subr.bf16.mxu0 %v3298_v37 }
 0x2e4   :  { %2294 = vmatpush1.bf16.msra.mxu1 %v3224_v0 }
 0x2e5   :  { %2295 = vmatprep.subr.bf16.mxu1 %v3229_v11  ;;  %2561 = vmatpush2.bf16.msra.mxu0 %v3296_v21 }
 0x2e6   :  { %2562 = vmatprep.subr.bf16.mxu0 %v3301_v23 }
 0x2e8   :  { %2296 = vmatpush1.bf16.msra.mxu1 %v3227_v39 }
 0x2e9   :  { %2297 = vmatprep.subr.bf16.mxu1 %v3235_v9  ;;  %2563 = vmatpush2.bf16.msra.mxu0 %v3299_v55 }
 0x2ec   :  { %2298 = vmatpush1.bf16.msra.mxu1 %v3233_v38 }
 0x2ed   :  { %2299 = vmatprep.subr.bf16.mxu1 %v3238_v62 }
 0x2f0   :  { %2300 = vmatpush2.bf16.msra.mxu1 %v3236_v36 }
 0x2f1   :  { %2301 = vmatprep.subr.bf16.mxu1 %v3241_v45 }
 0x2f4   :  { %2302 = vmatpush2.bf16.msra.mxu1 %v3239_v18 }
 0x2f5   :  { %2303 = vmatprep.subr.bf16.mxu1 %v3244_v50 }
 0x2f8   :  { %2304 = vmatpush2.bf16.msra.mxu1 %v3242_v26  ;;  %v2360_v26 = vld [vmem:[%s4265_s9] sm:$0x3]  ;;  %s2671_s9 = sshll.u32 %s3384_s7, 4  ;;  %s2672_s9 = int_to_ptr.vmem [resolvable:$true] %s2671_s9 }
 0x2f9   :  { %2305 = vmatprep.subr.bf16.mxu1 %v3250_v44  ;;  %v2365_v44 = vrot.slane %v2360_v26, %v3601_v43  ;;  %s3318_s19 = scalar_lea.vmem %s2672_s9, 32  ;;  %p3323_p1 = scmp.lt.s32.totalorder %s2672_s9, %s2672_s9 }
 0x2fa   :  { %p3319_p0 = scmp.ne.s32.totalorder %s2672_s9, %s3318_s19  ;;  %p3324_p2 = scmp.lt.s32.totalorder %s3318_s19, %s3318_s19 }
 0x2fc   :  { %2306 = vmatpush2.bf16.msra.mxu1 %v3248_v7  ;;  %v2369_v7 = vrot.slane %v2360_v26, %v3610_v46  ;;  %p3325_p3 = por %p3324_p2, %p3323_p1 }
 0x2fd   :  { %2307 = vmatprep.subr.bf16.mxu1 %v3253_v53 }
 0x2fe   :  { %p3326_p4 = pnand %p3325_p3, %p3319_p0 }
 0x300   :  { %2308 = vmatpush2.bf16.msra.mxu1 %v3251_v25 }
 0x301   :  { %2309 = vmatprep.subr.bf16.mxu1 %v3256_v63 }
 0x304   :  { %2310 = vmatpush2.bf16.msra.mxu1 %v3254_v28 }
 0x305   :  { %2311 = vmatprep.subr.bf16.mxu1 %v3259_v17 }
 0x308   :  { %2312 = vmatpush2.bf16.msra.mxu1 %v3257_v51 }
 0x309   :  { %2313 = vmatprep.subr.bf16.mxu1 %v3265_v59 }
 0x30c   :  { %2314 = vmatpush2.bf16.msra.mxu1 %v3263_v14 }
 0x38f   :  { %v2070_v27 = vpop.f32.mrf.mxu1 }
 0x390   :  { %v2071_v56 = vadd.f32 %v2070_v27, %v1869_v12 }
 0x391   :  { %v2072_v20 = vpop.f32.mrf.mxu1 }
 0x392   :  { %v2073_v41 = vadd.f32 %v2072_v20, %v1873_v58  ;;  %v2077_v33 = vpack.c.bf16 %v2071_v56, %v2071_v56 }
 0x393   :  { %v2074_v52 = vpop.f32.mrf.mxu1 }
 0x394   :  { %v2078_v42 = vpack.c.bf16 %v2073_v41, %v2073_v41 }
 0x395   :  { %v2075_v3 = vpop.f32.mrf.mxu1 }
 0x396   :  { %2315 = vmatprep.mubr.bf16.mxu1 %v2078_v42 }
 0x397   :  { %2316 = vmatmul.mubr.bf16.vlgmr.msra.gmra.mxu1 %v2077_v33 }
 0x457   :  { %v2317_v0 = vpop.f32.mrf.mxu1 }
 0x458   :  { %v2318_v11 = vadd.f32 %v2317_v0, %v2116_v10 }
 0x459   :  { %v2319_v39 = vpop.f32.mrf.mxu1 }
 0x45a   :  { %v2320_v9 = vadd.f32 %v2319_v39, %v2120_v47  ;;  %v2324_v38 = vmax.f32 %v2318_v11, 0.0 }
 0x45b   :  { %v2321_v62 = vpop.f32.mrf.mxu1 }
 0x45c   :  { %v2325_v36 = vmax.f32 %v2320_v9, 0.0  ;;  %v2326_v50 = vpack.c.bf16 %v2324_v38, %v2324_v38 }
 0x45d   :  { %v2322_v45 = vpop.f32.mrf.mxu1 }
 0x45e   :  { %v2327_v18 = vpack.c.bf16 %v2325_v36, %v2325_v36 }
 0x460   :  { %2564 = vmatprep.mubr.bf16.mxu0 %v2327_v18 }
 0x461   :  { %2565 = vmatmul.mubr.bf16.vlgmr.msra.gmra.mxu0 %v2326_v50 }
 0x521   :  { %v2566_v53 = vpop.f32.mrf.mxu0 }
 0x522   :  { %v2567_v25 = vadd.f32 %v2566_v53, %v2365_v44 }
 0x523   :  { %v2568_v63 = vpop.f32.mrf.mxu0 }
 0x524   :  { %v2577_v28 = vand.u32 2147483647, %v2567_v25  ;;  %v2569_v17 = vadd.f32 %v2568_v63, %v2369_v7  ;;  %v2576_v60 = vmax.f32 %v2567_v25, 0.0 }
 0x525   :  { %v2570_v51 = vpop.f32.mrf.mxu0 }
 0x526   :  { %v2578_v59 = vsub.f32 0.0, %v2577_v28  ;;  %v2595_v5 = vand.u32 2147483647, %v2569_v17  ;;  %v2594_v37 = vmax.f32 %v2569_v17, 0.0 }
 0x527   :  { %v2571_v6 = vpop.f32.mrf.mxu0 }
 0x528   :  { %v2579_v14 = vmul.f32 1.442695, %v2578_v59  ;;  %v2596_v61 = vsub.f32 0.0, %v2595_v5 }
 0x52a   :  { %3302 = vpow2.f32 %v2579_v14  ;;  %v2597_v13 = vmul.f32 1.442695, %v2596_v61 }
 0x52c   :  { %3304 = vpow2.f32 %v2597_v13 }
 0x537   :  { %v3303_v4 = vpop.eup %3302 }
 0x538   :  { %v2581_v22 = vadd.f32 1.0, %v3303_v4  ;;  %v2584_v46 = vmul.f32 -0.5, %v3303_v4  ;;  %v2587_v30 = vand.u32 2147483647, %v3303_v4 }
 0x539   :  { %v3305_v15 = vpop.eup %3304 }
 0x53a   :  { %3306 = vlog2.f32 %v2581_v22  ;;  %v2599_v43 = vadd.f32 1.0, %v3305_v15  ;;  %v2602_v1 = vmul.f32 -0.5, %v3305_v15  ;;  %v2585_v19 = vadd.f32 1.0, %v2584_v46 }
 0x53b   :  { %v2605_v35 = vand.u32 2147483647, %v3305_v15  ;;  %vm2588_vm0 = vcmp.lt.f32.partialorder %v2587_v30, 0.0004427343 }
 0x53c   :  { %3308 = vlog2.f32 %v2599_v43  ;;  %v2603_v2 = vadd.f32 1.0, %v2602_v1  ;;  %v2586_v32 = vmul.f32 %v3303_v4, %v2585_v19 }
 0x53d   :  { %vm2606_vm2 = vcmp.lt.f32.partialorder %v2605_v35, 0.0004427343 }
 0x53e   :  { %v2604_v57 = vmul.f32 %v3305_v15, %v2603_v2 }
 0x547   :  { %v3307_v48 = vpop.eup %3306 }
 0x548   :  { %v2583_v29 = vmul.f32 0.6931472, %v3307_v48 }
 0x549   :  { %v3309_v8 = vpop.eup %3308 }
 0x54a   :  { %v2589_v24 = vsel %vm2588_vm0, %v2586_v32, %v2583_v29  ;;  %v2601_v16 = vmul.f32 0.6931472, %v3309_v8 }
 0x54b   :  { %v2590_v54 = vadd.f32 %v2589_v24, %v2576_v60 }
 0x54c   :  { %v2607_v21 = vsel %vm2606_vm2, %v2604_v57, %v2601_v16 }
 0x54d   :  { %v2608_v23 = vadd.f32 %v2607_v21, %v2594_v37  ;;  %v2593_v55 = vsel %vm2575_vm1, %v2590_v54, 0.0 }
 0x54e   :  { %v2612_v31 = vadd.f32 1.0, %v2593_v55  ;;  %v2619_v27 = vsel %vm2614_vm3, %v2593_v55, 0.0 }
 0x54f   :  { %v2609_v40 = vsel %vm2575_vm1, %v2608_v23, 0.0 }
 0x550   :  { %v2615_v12 = vsel %vm2614_vm3, %v2609_v40, 0.0  ;;  %2613 = vst [vmem:[#allocation5] sm:$0x3] %v2612_v31  ;;  %v2610_v58 = vadd.f32 1.0, %v2609_v40 }
 0x551   :  { %2616 = vadd.xlane.f32.xlu0 %v2615_v12 }
 0x552   :  { %2611 = vst [vmem:[#allocation3] sm:$0x3] %v2610_v58 }
 0x555   :  { %2620 = vadd.xlane.f32.xlu0 %v2619_v27 }
 0x5da   :  { %v2617_v56 = vpop.xlane.xlu0 %2616 }
 0x5db   :  { %v2618_v20 = vadd.f32 8.0, %v2617_v56 }
 0x5dd   :  { %3310 = vrcp.f32 %v2618_v20 }
 0x5de   :  { %v2621_v41 = vpop.xlane.xlu0 %2620 }
 0x5df   :  { %v2622_v52 = vadd.f32 8.0, %v2621_v41 }
 0x5e1   :  { %3312 = vrcp.f32 %v2622_v52 }
 0x5ea   :  { %v3311_v42 = vpop.eup %3310 }
 0x5eb   :  { %v2624_v33 = vmul.f32 %v3311_v42, %v2609_v40  ;;  %v2627_v47 = vmul.f32 8.0, %v3311_v42 }
 0x5ed   :  { %v2629_v3 = vsel %vm2614_vm3, %v2624_v33, 0.0 }
 0x5ee   :  { %v3313_v49 = vpop.eup %3312  ;;  %2630 = vadd.xlane.f32.xlu1 %v2629_v3 }
 0x5ef   :  { %v2626_v10 = vmul.f32 %v3313_v49, %v2593_v55  ;;  %v2628_v0 = vmul.f32 8.0, %v3313_v49 }
 0x5f1   :  { %v2632_v11 = vsel %vm2614_vm3, %v2626_v10, 0.0  ;;  %v2636_v39 = vmul.f32 %v2626_v10, %v2624_v33  ;;  %v2642_v9 = vmul.f32 %v2628_v0, %v2624_v33  ;;  %v2644_v38 = vmul.f32 %v2627_v47, %v2626_v10 }
 0x5f2   :  { %2633 = vadd.xlane.f32.xlu1 %v2632_v11  ;;  %v2648_v62 = vmul.f32 %v2628_v0, %v2627_v47 }
 0x5f3   :  { %v2637_v36 = vsel %vm2614_vm3, %v2636_v39, 0.0  ;;  %v2643_v45 = vadd.f32 %v2642_v9, %v2636_v39 }
 0x5f4   :  { %2638 = vadd.xlane.f32.xlu0 %v2637_v36 }
 0x5f5   :  { %v2645_v18 = vadd.f32 %v2644_v38, %v2643_v45 }
 0x5f6   :  { %3329 = shalt.err (!%p3326_p4)
}
 0x5f7   :  { %2674 = dma.vmem_to_hbm [thread:$0]  %s2672_s9, 32, %s4267_s11, [#allocation6]  }
 0x5f8   :  { %s3338_s21 = scalar_lea.vmem %s2662_s18, 32  ;;  %p3343_p6 = scmp.lt.s32.totalorder %s2662_s18, %s2662_s18 }
 0x5f9   :  { %p3339_p5 = scmp.ne.s32.totalorder %s2662_s18, %s3338_s21  ;;  %p3344_p7 = scmp.lt.s32.totalorder %s3338_s21, %s3338_s21 }
 0x5fb   :  { %p3345_p8 = por %p3344_p7, %p3343_p6 }
 0x5fd   :  { %p3346_p9 = pnand %p3345_p8, %p3339_p5 }
 0x5ff   :  { %3349 = shalt.err (!%p3346_p9)
}
 0x600   :  { %2664 = dma.vmem_to_hbm [thread:$0]  %s2662_s18, 32, %s4266_s10, [#allocation4]  }
 0x601   :  { %s3386_s11 = smov [#allocation7]  }
 0x602   :  { %s2681_s23 = sshll.u32 %s3386_s11, 4  ;;  %s2682_s23 = int_to_ptr.vmem [resolvable:$true] %s2681_s23 }
 0x603   :  { %s3358_s10 = scalar_lea.vmem %s2682_s23, 32  ;;  %p3363_p11 = scmp.lt.s32.totalorder %s2682_s23, %s2682_s23 }
 0x604   :  { %p3359_p10 = scmp.ne.s32.totalorder %s2682_s23, %s3358_s10  ;;  %p3364_p12 = scmp.lt.s32.totalorder %s3358_s10, %s3358_s10 }
 0x606   :  { %p3365_p13 = por %p3364_p12, %p3363_p11 }
 0x608   :  { %p3366_p0 = pnand %p3365_p13, %p3359_p10 }
 0x677   :  { %v2631_v50 = vpop.xlane.xlu1 %2630 }
 0x67b   :  { %v2634_v26 = vpop.xlane.xlu1 %2633 }
 0x67c   :  { %v2635_v44 = vmul.f32 %v2634_v26, %v2631_v50 }
 0x67d   :  { %v2639_v7 = vpop.xlane.xlu0 %2638 }
 0x67e   :  { %v2640_v53 = vsub.f32 %v2635_v44, %v2639_v7 }
 0x680   :  { %v2641_v25 = vsub.f32 1.0, %v2640_v53 }
 0x682   :  { %3314 = vrcp.f32 %v2641_v25 }
 0x68f   :  { %v3315_v63 = vpop.eup %3314 }
 0x690   :  { %v2649_v28 = vmul.f32 %v3315_v63, %v2648_v62  ;;  %v2647_v51 = vmul.f32 %v3315_v63, %v2645_v18 }
 0x692   :  { %3316 = vrcp.f32 %v2649_v28 }
 0x69f   :  { %v3317_v17 = vpop.eup %3316 }
 0x6a0   :  { %v2651_v59 = vmul.f32 8.0, %v3317_v17 }
 0x6a2   :  { %v2652_v5 = vmul.f32 %v2651_v59, %v2647_v51 }
 0x6a4   :  { %v2653_v6 = vadd.f32 1.0, %v2652_v5 }
 0x6a6   :  { %2654 = vst [vmem:[#allocation7] sm:$0x3] %v2653_v6 }
 0x6a7   :  { %3369 = shalt.err (!%p3366_p0)
}
 0x6a8   :  { %2684 = dma.vmem_to_hbm [thread:$0]  %s2682_s23, 32, %s4268_s12, [#allocation6]  }
 0x6a9   :  { %3378 = dma.done.wait [#allocation4], 32  }
 0x6aa   :  { %3379 = vsyncadd [#allocation4], 4294967264 }
 0x6ab   :  { %3380 = dma.done.wait [#allocation6], 64  }
 0x6ac   :  { %3381 = vsyncadd [#allocation6], 4294967232 }
 0x6ad   :  { %2694 = vsyncpa [#allocation4], 1 }
 0x6ae   :  { %2695 = vsyncpa [#allocation6], 1 }

</bundles_post_ra>
